<compile_context>
chip_gen: v5e
topology: v5e:2x2
jax: 0.10.0
libtpu: 0.0.40
codegen_flags: <defaults>
</compile_context>

<pallas_src>
import functools
import math

import jax
import jax.numpy as jnp
from jax.experimental import pallas as pl
from jax.experimental.pallas import tpu as pltpu


def _gelu_new(x):
    # ACT2FN['gelu_new'] (tanh approximation used by ALBERT), f32 math.
    return 0.5 * x * (1.0 + jnp.tanh(
        math.sqrt(2.0 / math.pi) * (x + 0.044715 * x * x * x)))


def _layer_norm(x, w, b, eps):
    mean = jnp.mean(x, axis=-1, keepdims=True)
    xc = x - mean
    var = jnp.mean(xc * xc, axis=-1, keepdims=True)
    return xc * jax.lax.rsqrt(var + eps) * w + b


def albert_layer_kernel(
    xq_ref, xqb_ref, xkvb_ref,
    wq_ref, bq_ref, wk_ref, bk_ref, wv_ref, bv_ref, wd_ref,
    bd_ref, ln1w_ref, ln1b_ref,
    wf1_ref, bf1_ref, wf2_ref, bf2_ref, ln2w_ref, ln2b_ref,
    out_ref,
    proj_acc,
    *, group_size, head_size, eps, ffn_chunk, attn_resident,
):
    g_id = pl.program_id(2)                     # head-group index (reduction axis)
    wi = g_id if attn_resident else 0           # resident: index group in-kernel
    bf16 = jnp.bfloat16
    f32 = jnp.float32
    d = head_size

    xq_b = xqb_ref[0]                           # (tq, H) bf16  (query rows)
    xkv_b = xkvb_ref[0]                         # (S, H) bf16   (full sequence)

    # ---- grouped Q/K/V projections: (H x g*d) MXU matmuls, f32 accumulate ----
    # Softmax scale 1/sqrt(d) is pre-folded into wq / bq on the host.
    q = jnp.dot(xq_b, wq_ref[wi], preferred_element_type=f32) + bq_ref[wi]
    k = jnp.dot(xkv_b, wk_ref[wi], preferred_element_type=f32) + bk_ref[wi]
    v = jnp.dot(xkv_b, wv_ref[wi], preferred_element_type=f32) + bv_ref[wi]

    # ---- per-head softmax attention within the group (static unroll) ----
    ctx_parts = []
    for hh in range(group_size):
        lo = hh * d
        qh = q[:, lo:lo + d].astype(bf16)
        kh = k[:, lo:lo + d].astype(bf16)
        vh = v[:, lo:lo + d].astype(bf16)
        s = jax.lax.dot_general(qh, kh, (((1,), (1,)), ((), ())),
                                preferred_element_type=f32)          # (tq, S)
        m = jnp.max(s, axis=-1, keepdims=True)
        e = jnp.exp(s - m)
        p = e * pl.reciprocal(jnp.sum(e, axis=-1, keepdims=True), approx=True)
        ctx_parts.append(jnp.dot(p.astype(bf16), vh,
                                 preferred_element_type=f32).astype(bf16))
    ctx = ctx_parts[0] if group_size == 1 else jnp.concatenate(ctx_parts, axis=-1)

    # ---- group contribution to attention.dense: (tq, g*d) @ (g*d, H) ----
    contrib = jnp.dot(ctx, wd_ref[wi], preferred_element_type=f32)   # (tq, H)

    @pl.when(g_id == 0)
    def _():
        proj_acc[...] = contrib + bd_ref[...]       # bias folded into the init

    @pl.when(g_id > 0)
    def _():
        proj_acc[...] = proj_acc[...] + contrib

    # ---- last group: residual+LN, chunked FFN, residual+LN, lane-dense store ----
    @pl.when(g_id == pl.num_programs(2) - 1)
    def _():
        xq = xq_ref[0]                              # (tq, H) f32 residual input
        attn_out = _layer_norm(xq + proj_acc[...], ln1w_ref[...], ln1b_ref[...], eps)
        attn_b = attn_out.astype(bf16)

        tq, hidden = attn_out.shape
        inter = wf1_ref.shape[1]
        n_chunks = inter // ffn_chunk

        if n_chunks == 1:
            h1 = _gelu_new(jnp.dot(attn_b, wf1_ref[...],
                                   preferred_element_type=f32) + bf1_ref[...])
            h2 = jnp.dot(h1.astype(bf16), wf2_ref[...],
                         preferred_element_type=f32) + bf2_ref[...]
        else:
            def ffn_chunk_body(c, acc):
                lo = pl.multiple_of(c * ffn_chunk, ffn_chunk)
                h1c = jnp.dot(attn_b, wf1_ref[:, pl.ds(lo, ffn_chunk)],
                              preferred_element_type=f32)
                h1c = _gelu_new(h1c + bf1_ref[:, pl.ds(lo, ffn_chunk)])
                return acc + jnp.dot(h1c.astype(bf16),
                                     wf2_ref[pl.ds(lo, ffn_chunk), :],
                                     preferred_element_type=f32)
            h2 = jax.lax.fori_loop(
                0, n_chunks, ffn_chunk_body,
                jnp.zeros((tq, hidden), f32) + bf2_ref[...],
                unroll=n_chunks <= 2)

        out = _layer_norm(h2 + attn_out, ln2w_ref[...], ln2b_ref[...], eps)
        out_ref[0] = out.astype(out_ref.dtype)


def _pick_head_group(num_heads, d, target=256):
    """Largest divisor g of num_heads with g*d <= max(target, d).

    target=256 matches the v6e/v7x MXU width; it is also fine on v5e (128-wide
    MXU) since wider groups only change how many MXU passes one matmul takes.
    """
    best = 1
    for g in range(1, num_heads + 1):
        if num_heads % g == 0 and g * d <= max(target, d):
            best = g
    return best


def albert_layer(x, params, *, num_heads, eps=1e-12, seq_tile=512):
    """x: (B, S, H) float32. params: dict of f32 weights (see init_params)."""
    B, S, H = x.shape
    d = H // num_heads
    assert num_heads * d == H
    I = params["wf1"].shape[1]

    # ---- query-row tiling ----
    if S <= seq_tile:
        tq = S
    else:
        tq = S
        for cand in range(seq_tile, 7, -8):
            if S % cand == 0:
                tq = cand
                break
    q_tiles = S // tq
    # v7x has 2 TensorCores: make the parallel grid extent >= 2 when possible.
    if B * q_tiles < 2 and S % 16 == 0:
        tq = S // 2
        q_tiles = 2

    # ---- head grouping ----
    group_size = _pick_head_group(num_heads, d)
    n_groups = num_heads // group_size
    gd = group_size * d

    # ---- FFN intermediate chunking ----
    ffn_chunk = I
    if I > 512:
        for c in (512, 256, 128):
            if I % c == 0:
                ffn_chunk = c
                break
        # TODO(synk): I not a multiple of 128 falls back to a single (tq, I)
        # chunk; a padded/masked tail chunk would avoid the VMEM blow-up.

    bf16 = jnp.bfloat16
    scale = 1.0 / math.sqrt(d)

    def group_cols(w):        # (H, H) (in,out) -> (n_groups, H, g*d) bf16
        return w.reshape(H, n_groups, gd).transpose(1, 0, 2).astype(bf16)

    wq_g = group_cols(params["wq"] * scale)          # softmax scale folded in
    wk_g = group_cols(params["wk"])
    wv_g = group_cols(params["wv"])
    bq_g = (params["bq"] * scale).reshape(n_groups, 1, gd).astype(jnp.float32)
    bk_g = params["bk"].reshape(n_groups, 1, gd).astype(jnp.float32)
    bv_g = params["bv"].reshape(n_groups, 1, gd).astype(jnp.float32)
    wd_g = params["wd"].reshape(n_groups, gd, H).astype(bf16)    # (in,out) rows
    wf1 = params["wf1"].astype(bf16)                              # (H, I)
    wf2 = params["wf2"].astype(bf16)                              # (I, H)
    x_b = x.astype(bf16)                                          # K/V + Q operand

    # ---- per-generation VMEM budget ----
    try:
        vmem_cap = int(pltpu.get_tpu_info().vmem_capacity_bytes)
    except Exception:
        vmem_cap = 64 * 1024 * 1024
    vmem_budget = int(0.85 * vmem_cap)       # ~54 MiB on v7x, ~108 MiB on v5e/v6e

    attn_w_bytes = 4 * H * H * 2 + 3 * H * 4
    ffn_w_bytes = 2 * H * I * 2
    attn_resident = (attn_w_bytes + ffn_w_bytes) <= vmem_budget // 2

    attn_stream = attn_w_bytes if attn_resident else \
        2 * ((3 * H * gd + gd * H) * 2 + 3 * gd * 4)
    act_blocks = 2 * (tq * H * 4 + tq * H * 2 + S * H * 2) + 2 * tq * H * 4
    temporaries = (3 * tq * S * 4 + (tq + 2 * S) * gd * 4
                   + 3 * tq * max(ffn_chunk, H) * 4 + 6 * tq * H * 4)
    est = (ffn_w_bytes + (6 * H + I) * 4 + attn_stream + act_blocks
           + tq * H * 4 + temporaries)
    vmem_limit = int(min(max(int(1.5 * est), 32 * 1024 * 1024), vmem_budget))

    # ---- BlockSpecs ----
    resident = pl.BlockSpec(memory_space=pltpu.MemorySpace.VMEM)
    if attn_resident:
        wq_spec = wk_spec = wv_spec = wd_spec = resident
        bq_spec = bk_spec = bv_spec = resident
    else:
        wq_spec = wk_spec = wv_spec = pl.BlockSpec((1, H, gd), lambda b, q, g: (g, 0, 0))
        bq_spec = bk_spec = bv_spec = pl.BlockSpec((1, 1, gd), lambda b, q, g: (g, 0, 0))
        wd_spec = pl.BlockSpec((1, gd, H), lambda b, q, g: (g, 0, 0))

    in_specs = [
        pl.BlockSpec((1, tq, H), lambda b, q, g: (b, q, 0)),   # x f32 (residual/LN)
        pl.BlockSpec((1, tq, H), lambda b, q, g: (b, q, 0)),   # x bf16 (Q rows)
        pl.BlockSpec((1, S, H), lambda b, q, g: (b, 0, 0)),    # x bf16 (full seq K/V)
        wq_spec, bq_spec, wk_spec, bk_spec, wv_spec, bv_spec, wd_spec,
        resident, resident, resident,                          # bd, ln1_w, ln1_b
        resident, resident, resident, resident,                # wf1, bf1, wf2, bf2
        resident, resident,                                    # ln2_w, ln2_b
    ]

    operands = (
        x, x_b, x_b,
        wq_g, bq_g, wk_g, bk_g, wv_g, bv_g, wd_g,
        params["bd"], params["ln1_w"], params["ln1_b"],
        wf1, params["bf1"], wf2, params["bf2"],
        params["ln2_w"], params["ln2_b"],
    )

    kernel = functools.partial(
        albert_layer_kernel,
        group_size=group_size, head_size=d, eps=eps,
        ffn_chunk=ffn_chunk, attn_resident=attn_resident)

    return pl.pallas_call(
        kernel,
        out_shape=jax.ShapeDtypeStruct((B, S, H), x.dtype),
        grid=(B, q_tiles, n_groups),
        in_specs=in_specs,
        out_specs=pl.BlockSpec((1, tq, H), lambda b, q, g: (b, q, 0)),
        scratch_shapes=[pltpu.VMEM((tq, H), jnp.float32)],
        compiler_params=pltpu.CompilerParams(
            dimension_semantics=("parallel", "parallel", "arbitrary"),
            vmem_limit_bytes=vmem_limit),
    )(*operands)


def init_params(key, hidden, intermediate):
    """Deterministic synthetic parameters. Linear weights stored (in, out), f32."""
    ks = jax.random.split(key, 8)
    s = 0.02
    return {
        "wq": s * jax.random.normal(ks[0], (hidden, hidden), jnp.float32),
        "bq": jnp.zeros((1, hidden), jnp.float32),
        "wk": s * jax.random.normal(ks[1], (hidden, hidden), jnp.float32),
        "bk": jnp.zeros((1, hidden), jnp.float32),
        "wv": s * jax.random.normal(ks[2], (hidden, hidden), jnp.float32),
        "bv": jnp.zeros((1, hidden), jnp.float32),
        "wd": s * jax.random.normal(ks[3], (hidden, hidden), jnp.float32),
        "bd": 0.01 * jnp.ones((1, hidden), jnp.float32),
        "ln1_w": jnp.ones((1, hidden), jnp.float32),
        "ln1_b": jnp.zeros((1, hidden), jnp.float32),
        "wf1": s * jax.random.normal(ks[4], (hidden, intermediate), jnp.float32),
        "bf1": 0.01 * jnp.ones((1, intermediate), jnp.float32),
        "wf2": s * jax.random.normal(ks[5], (intermediate, hidden), jnp.float32),
        "bf2": 0.01 * jnp.ones((1, hidden), jnp.float32),
        "ln2_w": jnp.ones((1, hidden), jnp.float32),
        "ln2_b": jnp.zeros((1, hidden), jnp.float32),
    }


def albert_layer_ref(x, params, *, num_heads, eps=1e-12):
    """Pure-JAX f32 reference mirroring the PyTorch forward (sans quant steps)."""
    B, S, H = x.shape
    d = H // num_heads

    def lin(z, w, b):
        return jnp.einsum("bsh,ho->bso", z, w) + b[0]

    q = lin(x, params["wq"], params["bq"]).reshape(B, S, num_heads, d).transpose(0, 2, 1, 3)
    k = lin(x, params["wk"], params["bk"]).reshape(B, S, num_heads, d).transpose(0, 2, 1, 3)
    v = lin(x, params["wv"], params["bv"]).reshape(B, S, num_heads, d).transpose(0, 2, 1, 3)
    scores = jnp.einsum("bhqd,bhkd->bhqk", q, k) / math.sqrt(d)
    probs = jax.nn.softmax(scores, axis=-1)
    ctx = jnp.einsum("bhqk,bhkd->bhqd", probs, v).transpose(0, 2, 1, 3).reshape(B, S, H)
    proj = lin(ctx, params["wd"], params["bd"])

    def ln(z, w, b):
        mu = jnp.mean(z, -1, keepdims=True)
        var = jnp.mean((z - mu) ** 2, -1, keepdims=True)
        return (z - mu) / jnp.sqrt(var + eps) * w[0] + b[0]

    attn_out = ln(x + proj, params["ln1_w"], params["ln1_b"])
    h1 = _gelu_new(lin(attn_out, params["wf1"], params["bf1"]))
    h2 = lin(h1, params["wf2"], params["bf2"])
    return ln(h2 + attn_out, params["ln2_w"], params["ln2_b"])


if __name__ == "__main__":
    # Small ALBERT-like config: batch=2, seq=8, hidden=32, heads=4, ffn=64.
    B, S, H, NH, I = 2, 8, 32, 4, 64
    key = jax.random.PRNGKey(0)
    kx, kp = jax.random.split(key)
    x = jax.random.normal(kx, (B, S, H), jnp.float32)
    params = init_params(kp, H, I)

    out = albert_layer(x, params, num_heads=NH)
    out = jax.block_until_ready(out)

    ref = albert_layer_ref(x, params, num_heads=NH)
    assert out.shape == (B, S, H)
    assert bool(jnp.all(jnp.isfinite(out)))
    # bf16 MXU operands + approx reciprocal => compare to the f32 reference
    # with a correspondingly relaxed (but still tight) tolerance.
    assert bool(jnp.allclose(out, ref, atol=2e-2, rtol=2e-2))
    print("KERNEL_OK")
</pallas_src>

<mosaic_0001>
module attributes {stable_mosaic.version = 11 : i64} {
  func.func @albert_layer_kernel(%arg0: i32, %arg1: i32, %arg2: i32, %arg3: memref<1x8x32xf32, #tpu.memory_space<vmem>>, %arg4: memref<1x8x32xbf16, #tpu.memory_space<vmem>>, %arg5: memref<1x8x32xbf16, #tpu.memory_space<vmem>>, %arg6: memref<1x32x32xbf16, #tpu.memory_space<vmem>>, %arg7: memref<1x1x32xf32, #tpu.memory_space<vmem>>, %arg8: memref<1x32x32xbf16, #tpu.memory_space<vmem>>, %arg9: memref<1x1x32xf32, #tpu.memory_space<vmem>>, %arg10: memref<1x32x32xbf16, #tpu.memory_space<vmem>>, %arg11: memref<1x1x32xf32, #tpu.memory_space<vmem>>, %arg12: memref<1x32x32xbf16, #tpu.memory_space<vmem>>, %arg13: memref<1x32xf32, #tpu.memory_space<vmem>>, %arg14: memref<1x32xf32, #tpu.memory_space<vmem>>, %arg15: memref<1x32xf32, #tpu.memory_space<vmem>>, %arg16: memref<32x64xbf16, #tpu.memory_space<vmem>>, %arg17: memref<1x64xf32, #tpu.memory_space<vmem>>, %arg18: memref<64x32xbf16, #tpu.memory_space<vmem>>, %arg19: memref<1x32xf32, #tpu.memory_space<vmem>>, %arg20: memref<1x32xf32, #tpu.memory_space<vmem>>, %arg21: memref<1x32xf32, #tpu.memory_space<vmem>>, %arg22: memref<1x8x32xf32, #tpu.memory_space<vmem>>, %arg23: memref<8x32xf32, #tpu.memory_space<vmem>>) attributes {dimension_semantics = [#tpu.dimension_semantics<parallel>, #tpu.dimension_semantics<parallel>, #tpu.dimension_semantics<arbitrary>], iteration_bounds = array<i64: 2, 1, 1>, scalar_prefetch = 0 : i64, scratch_operands = 1 : i64, tpu.core_type = #tpu.core_type<tc>, window_params = [{transform_indices = @transform_0, window_bounds = array<i64: 1, 8, 32>}, {transform_indices = @transform_1, window_bounds = array<i64: 1, 8, 32>}, {transform_indices = @transform_2, window_bounds = array<i64: 1, 8, 32>}, {pipeline_mode = #tpu.pipeline_mode<synchronous>, transform_indices = @transform_3, window_bounds = array<i64: 1, 32, 32>}, {pipeline_mode = #tpu.pipeline_mode<synchronous>, transform_indices = @transform_4, window_bounds = array<i64: 1, 1, 32>}, {pipeline_mode = #tpu.pipeline_mode<synchronous>, transform_indices = @transform_5, window_bounds = array<i64: 1, 32, 32>}, {pipeline_mode = #tpu.pipeline_mode<synchronous>, transform_indices = @transform_6, window_bounds = array<i64: 1, 1, 32>}, {pipeline_mode = #tpu.pipeline_mode<synchronous>, transform_indices = @transform_7, window_bounds = array<i64: 1, 32, 32>}, {pipeline_mode = #tpu.pipeline_mode<synchronous>, transform_indices = @transform_8, window_bounds = array<i64: 1, 1, 32>}, {pipeline_mode = #tpu.pipeline_mode<synchronous>, transform_indices = @transform_9, window_bounds = array<i64: 1, 32, 32>}, {pipeline_mode = #tpu.pipeline_mode<synchronous>, transform_indices = @transform_10, window_bounds = array<i64: 1, 32>}, {pipeline_mode = #tpu.pipeline_mode<synchronous>, transform_indices = @transform_11, window_bounds = array<i64: 1, 32>}, {pipeline_mode = #tpu.pipeline_mode<synchronous>, transform_indices = @transform_12, window_bounds = array<i64: 1, 32>}, {pipeline_mode = #tpu.pipeline_mode<synchronous>, transform_indices = @transform_13, window_bounds = array<i64: 32, 64>}, {pipeline_mode = #tpu.pipeline_mode<synchronous>, transform_indices = @transform_14, window_bounds = array<i64: 1, 64>}, {pipeline_mode = #tpu.pipeline_mode<synchronous>, transform_indices = @transform_15, window_bounds = array<i64: 64, 32>}, {pipeline_mode = #tpu.pipeline_mode<synchronous>, transform_indices = @transform_16, window_bounds = array<i64: 1, 32>}, {pipeline_mode = #tpu.pipeline_mode<synchronous>, transform_indices = @transform_17, window_bounds = array<i64: 1, 32>}, {pipeline_mode = #tpu.pipeline_mode<synchronous>, transform_indices = @transform_18, window_bounds = array<i64: 1, 32>}, {transform_indices = @transform_19, window_bounds = array<i64: 1, 8, 32>}]} {
    %c0 = arith.constant 0 : index
    %c0_0 = arith.constant 0 : index
    %c0_1 = arith.constant 0 : index
    %0 = vector.load %arg4[%c0, %c0_0, %c0_1] : memref<1x8x32xbf16, #tpu.memory_space<vmem>>, vector<1x8x32xbf16>
    %1 = vector.shape_cast %0 : vector<1x8x32xbf16> to vector<8x32xbf16>
    %c0_2 = arith.constant 0 : index
    %c0_3 = arith.constant 0 : index
    %c0_4 = arith.constant 0 : index
    %2 = vector.load %arg5[%c0_2, %c0_3, %c0_4] : memref<1x8x32xbf16, #tpu.memory_space<vmem>>, vector<1x8x32xbf16>
    %3 = vector.shape_cast %2 : vector<1x8x32xbf16> to vector<8x32xbf16>
    %4 = arith.index_cast %arg2 : i32 to index
    %c0_5 = arith.constant 0 : index
    %c0_6 = arith.constant 0 : index
    %5 = vector.load %arg6[%4, %c0_5, %c0_6] : memref<1x32x32xbf16, #tpu.memory_space<vmem>>, vector<1x32x32xbf16>
    %6 = vector.shape_cast %5 : vector<1x32x32xbf16> to vector<32x32xbf16>
    %cst = arith.constant dense<0.000000e+00> : vector<8x32xf32>
    %7 = tpu.matmul %1, %6, %cst {dimension_numbers = #tpu.dot_dimension_numbers<[1], [0], [0], [1], [0, 0, 1, 1], [], []>} : vector<8x32xbf16>, vector<32x32xbf16>, vector<8x32xf32> -> vector<8x32xf32>
    %8 = arith.index_cast %arg2 : i32 to index
    %c0_7 = arith.constant 0 : index
    %c0_8 = arith.constant 0 : index
    %9 = vector.load %arg7[%8, %c0_7, %c0_8] : memref<1x1x32xf32, #tpu.memory_space<vmem>>, vector<1x1x32xf32>
    %10 = vector.shape_cast %9 : vector<1x1x32xf32> to vector<1x32xf32>
    %11 = vector.broadcast %10 : vector<1x32xf32> to vector<8x32xf32>
    %12 = arith.addf %7, %11 : vector<8x32xf32>
    %13 = arith.index_cast %arg2 : i32 to index
    %c0_9 = arith.constant 0 : index
    %c0_10 = arith.constant 0 : index
    %14 = vector.load %arg8[%13, %c0_9, %c0_10] : memref<1x32x32xbf16, #tpu.memory_space<vmem>>, vector<1x32x32xbf16>
    %15 = vector.shape_cast %14 : vector<1x32x32xbf16> to vector<32x32xbf16>
    %cst_11 = arith.constant dense<0.000000e+00> : vector<8x32xf32>
    %16 = tpu.matmul %3, %15, %cst_11 {dimension_numbers = #tpu.dot_dimension_numbers<[1], [0], [0], [1], [0, 0, 1, 1], [], []>} : vector<8x32xbf16>, vector<32x32xbf16>, vector<8x32xf32> -> vector<8x32xf32>
    %17 = arith.index_cast %arg2 : i32 to index
    %c0_12 = arith.constant 0 : index
    %c0_13 = arith.constant 0 : index
    %18 = vector.load %arg9[%17, %c0_12, %c0_13] : memref<1x1x32xf32, #tpu.memory_space<vmem>>, vector<1x1x32xf32>
    %19 = vector.shape_cast %18 : vector<1x1x32xf32> to vector<1x32xf32>
    %20 = vector.broadcast %19 : vector<1x32xf32> to vector<8x32xf32>
    %21 = arith.addf %16, %20 : vector<8x32xf32>
    %22 = arith.index_cast %arg2 : i32 to index
    %c0_14 = arith.constant 0 : index
    %c0_15 = arith.constant 0 : index
    %23 = vector.load %arg10[%22, %c0_14, %c0_15] : memref<1x32x32xbf16, #tpu.memory_space<vmem>>, vector<1x32x32xbf16>
    %24 = vector.shape_cast %23 : vector<1x32x32xbf16> to vector<32x32xbf16>
    %cst_16 = arith.constant dense<0.000000e+00> : vector<8x32xf32>
    %25 = tpu.matmul %3, %24, %cst_16 {dimension_numbers = #tpu.dot_dimension_numbers<[1], [0], [0], [1], [0, 0, 1, 1], [], []>} : vector<8x32xbf16>, vector<32x32xbf16>, vector<8x32xf32> -> vector<8x32xf32>
    %26 = arith.index_cast %arg2 : i32 to index
    %c0_17 = arith.constant 0 : index
    %c0_18 = arith.constant 0 : index
    %27 = vector.load %arg11[%26, %c0_17, %c0_18] : memref<1x1x32xf32, #tpu.memory_space<vmem>>, vector<1x1x32xf32>
    %28 = vector.shape_cast %27 : vector<1x1x32xf32> to vector<1x32xf32>
    %29 = vector.broadcast %28 : vector<1x32xf32> to vector<8x32xf32>
    %30 = arith.addf %25, %29 : vector<8x32xf32>
    %31 = vector.extract_strided_slice %12 {offsets = [0, 0], sizes = [8, 8], strides = [1, 1]} : vector<8x32xf32> to vector<8x8xf32>
    %32 = arith.truncf %31 : vector<8x8xf32> to vector<8x8xbf16>
    %33 = vector.extract_strided_slice %21 {offsets = [0, 0], sizes = [8, 8], strides = [1, 1]} : vector<8x32xf32> to vector<8x8xf32>
    %34 = arith.truncf %33 : vector<8x8xf32> to vector<8x8xbf16>
    %35 = vector.extract_strided_slice %30 {offsets = [0, 0], sizes = [8, 8], strides = [1, 1]} : vector<8x32xf32> to vector<8x8xf32>
    %36 = arith.truncf %35 : vector<8x8xf32> to vector<8x8xbf16>
    %cst_19 = arith.constant dense<0.000000e+00> : vector<8x8xf32>
    %37 = tpu.matmul %32, %34, %cst_19 {dimension_numbers = #tpu.dot_dimension_numbers<[1], [1], [0], [0], [0, 0, 1, 0], [], []>} : vector<8x8xbf16>, vector<8x8xbf16>, vector<8x8xf32> -> vector<8x8xf32>
    %cst_20 = arith.constant dense<0xFF800000> : vector<8xf32>
    %38 = vector.multi_reduction <maximumf>, %37, %cst_20 [1] : vector<8x8xf32> to vector<8xf32>
    %39 = vector.shape_cast %38 : vector<8xf32> to vector<8x1xf32>
    %40 = vector.broadcast %39 : vector<8x1xf32> to vector<8x8xf32>
    %41 = arith.subf %37, %40 : vector<8x8xf32>
    %42 = math.exp %41 : vector<8x8xf32>
    %cst_21 = arith.constant dense<0.000000e+00> : vector<8xf32>
    %43 = vector.multi_reduction <add>, %42, %cst_21 [1] : vector<8x8xf32> to vector<8xf32>
    %44 = vector.shape_cast %43 : vector<8xf32> to vector<8x1xf32>
    %45 = tpu.reciprocal %44 {approx = true} : vector<8x1xf32> -> vector<8x1xf32>
    %46 = vector.broadcast %45 : vector<8x1xf32> to vector<8x8xf32>
    %47 = arith.mulf %42, %46 : vector<8x8xf32>
    %48 = arith.truncf %47 : vector<8x8xf32> to vector<8x8xbf16>
    %cst_22 = arith.constant dense<0.000000e+00> : vector<8x8xf32>
    %49 = tpu.matmul %48, %36, %cst_22 {dimension_numbers = #tpu.dot_dimension_numbers<[1], [0], [0], [1], [0, 0, 1, 1], [], []>} : vector<8x8xbf16>, vector<8x8xbf16>, vector<8x8xf32> -> vector<8x8xf32>
    %50 = arith.truncf %49 : vector<8x8xf32> to vector<8x8xbf16>
    %51 = vector.extract_strided_slice %12 {offsets = [0, 8], sizes = [8, 8], strides = [1, 1]} : vector<8x32xf32> to vector<8x8xf32>
    %52 = arith.truncf %51 : vector<8x8xf32> to vector<8x8xbf16>
    %53 = vector.extract_strided_slice %21 {offsets = [0, 8], sizes = [8, 8], strides = [1, 1]} : vector<8x32xf32> to vector<8x8xf32>
    %54 = arith.truncf %53 : vector<8x8xf32> to vector<8x8xbf16>
    %55 = vector.extract_strided_slice %30 {offsets = [0, 8], sizes = [8, 8], strides = [1, 1]} : vector<8x32xf32> to vector<8x8xf32>
    %56 = arith.truncf %55 : vector<8x8xf32> to vector<8x8xbf16>
    %cst_23 = arith.constant dense<0.000000e+00> : vector<8x8xf32>
    %57 = tpu.matmul %52, %54, %cst_23 {dimension_numbers = #tpu.dot_dimension_numbers<[1], [1], [0], [0], [0, 0, 1, 0], [], []>} : vector<8x8xbf16>, vector<8x8xbf16>, vector<8x8xf32> -> vector<8x8xf32>
    %cst_24 = arith.constant dense<0xFF800000> : vector<8xf32>
    %58 = vector.multi_reduction <maximumf>, %57, %cst_24 [1] : vector<8x8xf32> to vector<8xf32>
    %59 = vector.shape_cast %58 : vector<8xf32> to vector<8x1xf32>
    %60 = vector.broadcast %59 : vector<8x1xf32> to vector<8x8xf32>
    %61 = arith.subf %57, %60 : vector<8x8xf32>
    %62 = math.exp %61 : vector<8x8xf32>
    %cst_25 = arith.constant dense<0.000000e+00> : vector<8xf32>
    %63 = vector.multi_reduction <add>, %62, %cst_25 [1] : vector<8x8xf32> to vector<8xf32>
    %64 = vector.shape_cast %63 : vector<8xf32> to vector<8x1xf32>
    %65 = tpu.reciprocal %64 {approx = true} : vector<8x1xf32> -> vector<8x1xf32>
    %66 = vector.broadcast %65 : vector<8x1xf32> to vector<8x8xf32>
    %67 = arith.mulf %62, %66 : vector<8x8xf32>
    %68 = arith.truncf %67 : vector<8x8xf32> to vector<8x8xbf16>
    %cst_26 = arith.constant dense<0.000000e+00> : vector<8x8xf32>
    %69 = tpu.matmul %68, %56, %cst_26 {dimension_numbers = #tpu.dot_dimension_numbers<[1], [0], [0], [1], [0, 0, 1, 1], [], []>} : vector<8x8xbf16>, vector<8x8xbf16>, vector<8x8xf32> -> vector<8x8xf32>
    %70 = arith.truncf %69 : vector<8x8xf32> to vector<8x8xbf16>
    %71 = vector.extract_strided_slice %12 {offsets = [0, 16], sizes = [8, 8], strides = [1, 1]} : vector<8x32xf32> to vector<8x8xf32>
    %72 = arith.truncf %71 : vector<8x8xf32> to vector<8x8xbf16>
    %73 = vector.extract_strided_slice %21 {offsets = [0, 16], sizes = [8, 8], strides = [1, 1]} : vector<8x32xf32> to vector<8x8xf32>
    %74 = arith.truncf %73 : vector<8x8xf32> to vector<8x8xbf16>
    %75 = vector.extract_strided_slice %30 {offsets = [0, 16], sizes = [8, 8], strides = [1, 1]} : vector<8x32xf32> to vector<8x8xf32>
    %76 = arith.truncf %75 : vector<8x8xf32> to vector<8x8xbf16>
    %cst_27 = arith.constant dense<0.000000e+00> : vector<8x8xf32>
    %77 = tpu.matmul %72, %74, %cst_27 {dimension_numbers = #tpu.dot_dimension_numbers<[1], [1], [0], [0], [0, 0, 1, 0], [], []>} : vector<8x8xbf16>, vector<8x8xbf16>, vector<8x8xf32> -> vector<8x8xf32>
    %cst_28 = arith.constant dense<0xFF800000> : vector<8xf32>
    %78 = vector.multi_reduction <maximumf>, %77, %cst_28 [1] : vector<8x8xf32> to vector<8xf32>
    %79 = vector.shape_cast %78 : vector<8xf32> to vector<8x1xf32>
    %80 = vector.broadcast %79 : vector<8x1xf32> to vector<8x8xf32>
    %81 = arith.subf %77, %80 : vector<8x8xf32>
    %82 = math.exp %81 : vector<8x8xf32>
    %cst_29 = arith.constant dense<0.000000e+00> : vector<8xf32>
    %83 = vector.multi_reduction <add>, %82, %cst_29 [1] : vector<8x8xf32> to vector<8xf32>
    %84 = vector.shape_cast %83 : vector<8xf32> to vector<8x1xf32>
    %85 = tpu.reciprocal %84 {approx = true} : vector<8x1xf32> -> vector<8x1xf32>
    %86 = vector.broadcast %85 : vector<8x1xf32> to vector<8x8xf32>
    %87 = arith.mulf %82, %86 : vector<8x8xf32>
    %88 = arith.truncf %87 : vector<8x8xf32> to vector<8x8xbf16>
    %cst_30 = arith.constant dense<0.000000e+00> : vector<8x8xf32>
    %89 = tpu.matmul %88, %76, %cst_30 {dimension_numbers = #tpu.dot_dimension_numbers<[1], [0], [0], [1], [0, 0, 1, 1], [], []>} : vector<8x8xbf16>, vector<8x8xbf16>, vector<8x8xf32> -> vector<8x8xf32>
    %90 = arith.truncf %89 : vector<8x8xf32> to vector<8x8xbf16>
    %91 = vector.extract_strided_slice %12 {offsets = [0, 24], sizes = [8, 8], strides = [1, 1]} : vector<8x32xf32> to vector<8x8xf32>
    %92 = arith.truncf %91 : vector<8x8xf32> to vector<8x8xbf16>
    %93 = vector.extract_strided_slice %21 {offsets = [0, 24], sizes = [8, 8], strides = [1, 1]} : vector<8x32xf32> to vector<8x8xf32>
    %94 = arith.truncf %93 : vector<8x8xf32> to vector<8x8xbf16>
    %95 = vector.extract_strided_slice %30 {offsets = [0, 24], sizes = [8, 8], strides = [1, 1]} : vector<8x32xf32> to vector<8x8xf32>
    %96 = arith.truncf %95 : vector<8x8xf32> to vector<8x8xbf16>
    %cst_31 = arith.constant dense<0.000000e+00> : vector<8x8xf32>
    %97 = tpu.matmul %92, %94, %cst_31 {dimension_numbers = #tpu.dot_dimension_numbers<[1], [1], [0], [0], [0, 0, 1, 0], [], []>} : vector<8x8xbf16>, vector<8x8xbf16>, vector<8x8xf32> -> vector<8x8xf32>
    %cst_32 = arith.constant dense<0xFF800000> : vector<8xf32>
    %98 = vector.multi_reduction <maximumf>, %97, %cst_32 [1] : vector<8x8xf32> to vector<8xf32>
    %99 = vector.shape_cast %98 : vector<8xf32> to vector<8x1xf32>
    %100 = vector.broadcast %99 : vector<8x1xf32> to vector<8x8xf32>
    %101 = arith.subf %97, %100 : vector<8x8xf32>
    %102 = math.exp %101 : vector<8x8xf32>
    %cst_33 = arith.constant dense<0.000000e+00> : vector<8xf32>
    %103 = vector.multi_reduction <add>, %102, %cst_33 [1] : vector<8x8xf32> to vector<8xf32>
    %104 = vector.shape_cast %103 : vector<8xf32> to vector<8x1xf32>
    %105 = tpu.reciprocal %104 {approx = true} : vector<8x1xf32> -> vector<8x1xf32>
    %106 = vector.broadcast %105 : vector<8x1xf32> to vector<8x8xf32>
    %107 = arith.mulf %102, %106 : vector<8x8xf32>
    %108 = arith.truncf %107 : vector<8x8xf32> to vector<8x8xbf16>
    %cst_34 = arith.constant dense<0.000000e+00> : vector<8x8xf32>
    %109 = tpu.matmul %108, %96, %cst_34 {dimension_numbers = #tpu.dot_dimension_numbers<[1], [0], [0], [1], [0, 0, 1, 1], [], []>} : vector<8x8xbf16>, vector<8x8xbf16>, vector<8x8xf32> -> vector<8x8xf32>
    %110 = arith.truncf %109 : vector<8x8xf32> to vector<8x8xbf16>
    %111 = tpu.concatenate %50, %70, %90, %110 in 1 : vector<8x8xbf16>, vector<8x8xbf16>, vector<8x8xbf16>, vector<8x8xbf16> -> vector<8x32xbf16>
    %112 = arith.index_cast %arg2 : i32 to index
    %c0_35 = arith.constant 0 : index
    %c0_36 = arith.constant 0 : index
    %113 = vector.load %arg12[%112, %c0_35, %c0_36] : memref<1x32x32xbf16, #tpu.memory_space<vmem>>, vector<1x32x32xbf16>
    %114 = vector.shape_cast %113 : vector<1x32x32xbf16> to vector<32x32xbf16>
    %cst_37 = arith.constant dense<0.000000e+00> : vector<8x32xf32>
    %115 = tpu.matmul %111, %114, %cst_37 {dimension_numbers = #tpu.dot_dimension_numbers<[1], [0], [0], [1], [0, 0, 1, 1], [], []>} : vector<8x32xbf16>, vector<32x32xbf16>, vector<8x32xf32> -> vector<8x32xf32>
    %c0_i32 = arith.constant 0 : i32
    %116 = arith.cmpi eq, %arg2, %c0_i32 : i32
    %117 = arith.extui %116 : i1 to i32
    %c0_i32_38 = arith.constant 0 : i32
    %118 = arith.cmpi ne, %117, %c0_i32_38 : i32
    scf.if %118 {
      %c0_43 = arith.constant 0 : index
      %c0_44 = arith.constant 0 : index
      %125 = vector.load %arg13[%c0_43, %c0_44] : memref<1x32xf32, #tpu.memory_space<vmem>>, vector<1x32xf32>
      %126 = vector.broadcast %125 : vector<1x32xf32> to vector<8x32xf32>
      %127 = arith.addf %115, %126 : vector<8x32xf32>
      %c0_45 = arith.constant 0 : index
      %c0_46 = arith.constant 0 : index
      %128 = vector.load %arg23[%c0_45, %c0_46] : memref<8x32xf32, #tpu.memory_space<vmem>>, vector<8x32xf32>
      tpu.vector_store %arg23[%c0_45, %c0_46], %127 {strides = array<i32>} : memref<8x32xf32, #tpu.memory_space<vmem>>, vector<8x32xf32>,
    } else {
    }
    %c0_i32_39 = arith.constant 0 : i32
    %119 = arith.cmpi sgt, %arg2, %c0_i32_39 : i32
    %120 = arith.extui %119 : i1 to i32
    %c0_i32_40 = arith.constant 0 : i32
    %121 = arith.cmpi ne, %120, %c0_i32_40 : i32
    scf.if %121 {
      %c0_43 = arith.constant 0 : index
      %c0_44 = arith.constant 0 : index
      %125 = vector.load %arg23[%c0_43, %c0_44] : memref<8x32xf32, #tpu.memory_space<vmem>>, vector<8x32xf32>
      %126 = arith.addf %125, %115 : vector<8x32xf32>
      %c0_45 = arith.constant 0 : index
      %c0_46 = arith.constant 0 : index
      %127 = vector.load %arg23[%c0_45, %c0_46] : memref<8x32xf32, #tpu.memory_space<vmem>>, vector<8x32xf32>
      tpu.vector_store %arg23[%c0_45, %c0_46], %126 {strides = array<i32>} : memref<8x32xf32, #tpu.memory_space<vmem>>, vector<8x32xf32>,
    } else {
    }
    %c0_i32_41 = arith.constant 0 : i32
    %122 = arith.cmpi eq, %arg2, %c0_i32_41 : i32
    %123 = arith.extui %122 : i1 to i32
    %c0_i32_42 = arith.constant 0 : i32
    %124 = arith.cmpi ne, %123, %c0_i32_42 : i32
    scf.if %124 {
      %c0_43 = arith.constant 0 : index
      %c0_44 = arith.constant 0 : index
      %c0_45 = arith.constant 0 : index
      %125 = vector.load %arg3[%c0_43, %c0_44, %c0_45] : memref<1x8x32xf32, #tpu.memory_space<vmem>>, vector<1x8x32xf32>
      %126 = vector.shape_cast %125 : vector<1x8x32xf32> to vector<8x32xf32>
      %c0_46 = arith.constant 0 : index
      %c0_47 = arith.constant 0 : index
      %127 = vector.load %arg23[%c0_46, %c0_47] : memref<8x32xf32, #tpu.memory_space<vmem>>, vector<8x32xf32>
      %128 = arith.addf %126, %127 : vector<8x32xf32>
      %c0_48 = arith.constant 0 : index
      %c0_49 = arith.constant 0 : index
      %129 = vector.load %arg14[%c0_48, %c0_49] : memref<1x32xf32, #tpu.memory_space<vmem>>, vector<1x32xf32>
      %c0_50 = arith.constant 0 : index
      %c0_51 = arith.constant 0 : index
      %130 = vector.load %arg15[%c0_50, %c0_51] : memref<1x32xf32, #tpu.memory_space<vmem>>, vector<1x32xf32>
      %cst_52 = arith.constant dense<0.000000e+00> : vector<8xf32>
      %131 = vector.multi_reduction <add>, %128, %cst_52 [1] : vector<8x32xf32> to vector<8xf32>
      %132 = vector.shape_cast %131 : vector<8xf32> to vector<8x1xf32>
      %cst_53 = arith.constant 3.200000e+01 : f32
      %133 = vector.broadcast %cst_53 : f32 to vector<8x1xf32>
      %134 = arith.divf %132, %133 : vector<8x1xf32>
      %135 = vector.broadcast %134 : vector<8x1xf32> to vector<8x32xf32>
      %136 = arith.subf %128, %135 : vector<8x32xf32>
      %137 = arith.mulf %136, %136 : vector<8x32xf32>
      %cst_54 = arith.constant dense<0.000000e+00> : vector<8xf32>
      %138 = vector.multi_reduction <add>, %137, %cst_54 [1] : vector<8x32xf32> to vector<8xf32>
      %139 = vector.shape_cast %138 : vector<8xf32> to vector<8x1xf32>
      %cst_55 = arith.constant 3.200000e+01 : f32
      %140 = vector.broadcast %cst_55 : f32 to vector<8x1xf32>
      %141 = arith.divf %139, %140 : vector<8x1xf32>
      %cst_56 = arith.constant 9.99999996E-13 : f32
      %142 = vector.broadcast %cst_56 : f32 to vector<8x1xf32>
      %143 = arith.addf %141, %142 : vector<8x1xf32>
      %144 = math.rsqrt %143 : vector<8x1xf32>
      %145 = vector.broadcast %144 : vector<8x1xf32> to vector<8x32xf32>
      %146 = arith.mulf %136, %145 : vector<8x32xf32>
      %147 = vector.broadcast %129 : vector<1x32xf32> to vector<8x32xf32>
      %148 = arith.mulf %146, %147 : vector<8x32xf32>
      %149 = vector.broadcast %130 : vector<1x32xf32> to vector<8x32xf32>
      %150 = arith.addf %148, %149 : vector<8x32xf32>
      %151 = arith.truncf %150 : vector<8x32xf32> to vector<8x32xbf16>
      %c0_57 = arith.constant 0 : index
      %c0_58 = arith.constant 0 : index
      %152 = vector.load %arg16[%c0_57, %c0_58] : memref<32x64xbf16, #tpu.memory_space<vmem>>, vector<32x64xbf16>
      %cst_59 = arith.constant dense<0.000000e+00> : vector<8x64xf32>
      %153 = tpu.matmul %151, %152, %cst_59 {dimension_numbers = #tpu.dot_dimension_numbers<[1], [0], [0], [1], [0, 0, 1, 1], [], []>} : vector<8x32xbf16>, vector<32x64xbf16>, vector<8x64xf32> -> vector<8x64xf32>
      %c0_60 = arith.constant 0 : index
      %c0_61 = arith.constant 0 : index
      %154 = vector.load %arg17[%c0_60, %c0_61] : memref<1x64xf32, #tpu.memory_space<vmem>>, vector<1x64xf32>
      %155 = vector.broadcast %154 : vector<1x64xf32> to vector<8x64xf32>
      %156 = arith.addf %153, %155 : vector<8x64xf32>
      %cst_62 = arith.constant 5.000000e-01 : f32
      %157 = vector.broadcast %cst_62 : f32 to vector<8x64xf32>
      %158 = arith.mulf %157, %156 : vector<8x64xf32>
      %cst_63 = arith.constant 4.471500e-02 : f32
      %159 = vector.broadcast %cst_63 : f32 to vector<8x64xf32>
      %160 = arith.mulf %159, %156 : vector<8x64xf32>
      %161 = arith.mulf %160, %156 : vector<8x64xf32>
      %162 = arith.mulf %161, %156 : vector<8x64xf32>
      %163 = arith.addf %156, %162 : vector<8x64xf32>
      %cst_64 = arith.constant 0.797884583 : f32
      %164 = vector.broadcast %cst_64 : f32 to vector<8x64xf32>
      %165 = arith.mulf %164, %163 : vector<8x64xf32>
      %166 = math.tanh %165 : vector<8x64xf32>
      %cst_65 = arith.constant 1.000000e+00 : f32
      %167 = vector.broadcast %cst_65 : f32 to vector<8x64xf32>
      %168 = arith.addf %167, %166 : vector<8x64xf32>
      %169 = arith.mulf %158, %168 : vector<8x64xf32>
      %170 = arith.truncf %169 : vector<8x64xf32> to vector<8x64xbf16>
      %c0_66 = arith.constant 0 : index
      %c0_67 = arith.constant 0 : index
      %171 = vector.load %arg18[%c0_66, %c0_67] : memref<64x32xbf16, #tpu.memory_space<vmem>>, vector<64x32xbf16>
      %cst_68 = arith.constant dense<0.000000e+00> : vector<8x32xf32>
      %172 = tpu.matmul %170, %171, %cst_68 {dimension_numbers = #tpu.dot_dimension_numbers<[1], [0], [0], [1], [0, 0, 1, 1], [], []>} : vector<8x64xbf16>, vector<64x32xbf16>, vector<8x32xf32> -> vector<8x32xf32>
      %c0_69 = arith.constant 0 : index
      %c0_70 = arith.constant 0 : index
      %173 = vector.load %arg19[%c0_69, %c0_70] : memref<1x32xf32, #tpu.memory_space<vmem>>, vector<1x32xf32>
      %174 = vector.broadcast %173 : vector<1x32xf32> to vector<8x32xf32>
      %175 = arith.addf %172, %174 : vector<8x32xf32>
      %176 = arith.addf %175, %150 : vector<8x32xf32>
      %c0_71 = arith.constant 0 : index
      %c0_72 = arith.constant 0 : index
      %177 = vector.load %arg20[%c0_71, %c0_72] : memref<1x32xf32, #tpu.memory_space<vmem>>, vector<1x32xf32>
      %c0_73 = arith.constant 0 : index
      %c0_74 = arith.constant 0 : index
      %178 = vector.load %arg21[%c0_73, %c0_74] : memref<1x32xf32, #tpu.memory_space<vmem>>, vector<1x32xf32>
      %cst_75 = arith.constant dense<0.000000e+00> : vector<8xf32>
      %179 = vector.multi_reduction <add>, %176, %cst_75 [1] : vector<8x32xf32> to vector<8xf32>
      %180 = vector.shape_cast %179 : vector<8xf32> to vector<8x1xf32>
      %cst_76 = arith.constant 3.200000e+01 : f32
      %181 = vector.broadcast %cst_76 : f32 to vector<8x1xf32>
      %182 = arith.divf %180, %181 : vector<8x1xf32>
      %183 = vector.broadcast %182 : vector<8x1xf32> to vector<8x32xf32>
      %184 = arith.subf %176, %183 : vector<8x32xf32>
      %185 = arith.mulf %184, %184 : vector<8x32xf32>
      %cst_77 = arith.constant dense<0.000000e+00> : vector<8xf32>
      %186 = vector.multi_reduction <add>, %185, %cst_77 [1] : vector<8x32xf32> to vector<8xf32>
      %187 = vector.shape_cast %186 : vector<8xf32> to vector<8x1xf32>
      %cst_78 = arith.constant 3.200000e+01 : f32
      %188 = vector.broadcast %cst_78 : f32 to vector<8x1xf32>
      %189 = arith.divf %187, %188 : vector<8x1xf32>
      %cst_79 = arith.constant 9.99999996E-13 : f32
      %190 = vector.broadcast %cst_79 : f32 to vector<8x1xf32>
      %191 = arith.addf %189, %190 : vector<8x1xf32>
      %192 = math.rsqrt %191 : vector<8x1xf32>
      %193 = vector.broadcast %192 : vector<8x1xf32> to vector<8x32xf32>
      %194 = arith.mulf %184, %193 : vector<8x32xf32>
      %195 = vector.broadcast %177 : vector<1x32xf32> to vector<8x32xf32>
      %196 = arith.mulf %194, %195 : vector<8x32xf32>
      %197 = vector.broadcast %178 : vector<1x32xf32> to vector<8x32xf32>
      %198 = arith.addf %196, %197 : vector<8x32xf32>
      %c0_80 = arith.constant 0 : index
      %c0_81 = arith.constant 0 : index
      %c0_82 = arith.constant 0 : index
      %199 = vector.load %arg22[%c0_80, %c0_81, %c0_82] : memref<1x8x32xf32, #tpu.memory_space<vmem>>, vector<1x8x32xf32>
      %200 = vector.shape_cast %199 : vector<1x8x32xf32> to vector<8x32xf32>
      %201 = vector.shape_cast %198 : vector<8x32xf32> to vector<1x8x32xf32>
      tpu.vector_store %arg22[%c0_80, %c0_81, %c0_82], %201 {strides = array<i32>} : memref<1x8x32xf32, #tpu.memory_space<vmem>>, vector<1x8x32xf32>,
    } else {
    }
    return
  }
  func.func @transform_0(%arg0: i32, %arg1: i32, %arg2: i32) -> (i32, i32, i32) {
    %c0_i32 = arith.constant 0 : i32
    %c0_i32_0 = arith.constant 0 : i32
    return %arg0, %arg1, %c0_i32 : i32, i32, i32
  }
  func.func @transform_1(%arg0: i32, %arg1: i32, %arg2: i32) -> (i32, i32, i32) {
    %c0_i32 = arith.constant 0 : i32
    %c0_i32_0 = arith.constant 0 : i32
    return %arg0, %arg1, %c0_i32 : i32, i32, i32
  }
  func.func @transform_2(%arg0: i32, %arg1: i32, %arg2: i32) -> (i32, i32, i32) {
    %c0_i32 = arith.constant 0 : i32
    %c0_i32_0 = arith.constant 0 : i32
    %c0_i32_1 = arith.constant 0 : i32
    return %arg0, %c0_i32, %c0_i32_0 : i32, i32, i32
  }
  func.func @transform_3(%arg0: i32, %arg1: i32, %arg2: i32) -> (i32, i32, i32) {
    %c0_i32 = arith.constant 0 : i32
    %c0_i32_0 = arith.constant 0 : i32
    %c0_i32_1 = arith.constant 0 : i32
    %c0_i32_2 = arith.constant 0 : i32
    return %c0_i32, %c0_i32_0, %c0_i32_1 : i32, i32, i32
  }
  func.func @transform_4(%arg0: i32, %arg1: i32, %arg2: i32) -> (i32, i32, i32) {
    %c0_i32 = arith.constant 0 : i32
    %c0_i32_0 = arith.constant 0 : i32
    %c0_i32_1 = arith.constant 0 : i32
    %c0_i32_2 = arith.constant 0 : i32
    return %c0_i32, %c0_i32_0, %c0_i32_1 : i32, i32, i32
  }
  func.func @transform_5(%arg0: i32, %arg1: i32, %arg2: i32) -> (i32, i32, i32) {
    %c0_i32 = arith.constant 0 : i32
    %c0_i32_0 = arith.constant 0 : i32
    %c0_i32_1 = arith.constant 0 : i32
    %c0_i32_2 = arith.constant 0 : i32
    return %c0_i32, %c0_i32_0, %c0_i32_1 : i32, i32, i32
  }
  func.func @transform_6(%arg0: i32, %arg1: i32, %arg2: i32) -> (i32, i32, i32) {
    %c0_i32 = arith.constant 0 : i32
    %c0_i32_0 = arith.constant 0 : i32
    %c0_i32_1 = arith.constant 0 : i32
    %c0_i32_2 = arith.constant 0 : i32
    return %c0_i32, %c0_i32_0, %c0_i32_1 : i32, i32, i32
  }
  func.func @transform_7(%arg0: i32, %arg1: i32, %arg2: i32) -> (i32, i32, i32) {
    %c0_i32 = arith.constant 0 : i32
    %c0_i32_0 = arith.constant 0 : i32
    %c0_i32_1 = arith.constant 0 : i32
    %c0_i32_2 = arith.constant 0 : i32
    return %c0_i32, %c0_i32_0, %c0_i32_1 : i32, i32, i32
  }
  func.func @transform_8(%arg0: i32, %arg1: i32, %arg2: i32) -> (i32, i32, i32) {
    %c0_i32 = arith.constant 0 : i32
    %c0_i32_0 = arith.constant 0 : i32
    %c0_i32_1 = arith.constant 0 : i32
    %c0_i32_2 = arith.constant 0 : i32
    return %c0_i32, %c0_i32_0, %c0_i32_1 : i32, i32, i32
  }
  func.func @transform_9(%arg0: i32, %arg1: i32, %arg2: i32) -> (i32, i32, i32) {
    %c0_i32 = arith.constant 0 : i32
    %c0_i32_0 = arith.constant 0 : i32
    %c0_i32_1 = arith.constant 0 : i32
    %c0_i32_2 = arith.constant 0 : i32
    return %c0_i32, %c0_i32_0, %c0_i32_1 : i32, i32, i32
  }
  func.func @transform_10(%arg0: i32, %arg1: i32, %arg2: i32) -> (i32, i32) {
    %c0_i32 = arith.constant 0 : i32
    %c0_i32_0 = arith.constant 0 : i32
    %c0_i32_1 = arith.constant 0 : i32
    return %c0_i32, %c0_i32_0 : i32, i32
  }
  func.func @transform_11(%arg0: i32, %arg1: i32, %arg2: i32) -> (i32, i32) {
    %c0_i32 = arith.constant 0 : i32
    %c0_i32_0 = arith.constant 0 : i32
    %c0_i32_1 = arith.constant 0 : i32
    return %c0_i32, %c0_i32_0 : i32, i32
  }
  func.func @transform_12(%arg0: i32, %arg1: i32, %arg2: i32) -> (i32, i32) {
    %c0_i32 = arith.constant 0 : i32
    %c0_i32_0 = arith.constant 0 : i32
    %c0_i32_1 = arith.constant 0 : i32
    return %c0_i32, %c0_i32_0 : i32, i32
  }
  func.func @transform_13(%arg0: i32, %arg1: i32, %arg2: i32) -> (i32, i32) {
    %c0_i32 = arith.constant 0 : i32
    %c0_i32_0 = arith.constant 0 : i32
    %c0_i32_1 = arith.constant 0 : i32
    return %c0_i32, %c0_i32_0 : i32, i32
  }
  func.func @transform_14(%arg0: i32, %arg1: i32, %arg2: i32) -> (i32, i32) {
    %c0_i32 = arith.constant 0 : i32
    %c0_i32_0 = arith.constant 0 : i32
    %c0_i32_1 = arith.constant 0 : i32
    return %c0_i32, %c0_i32_0 : i32, i32
  }
  func.func @transform_15(%arg0: i32, %arg1: i32, %arg2: i32) -> (i32, i32) {
    %c0_i32 = arith.constant 0 : i32
    %c0_i32_0 = arith.constant 0 : i32
    %c0_i32_1 = arith.constant 0 : i32
    return %c0_i32, %c0_i32_0 : i32, i32
  }
  func.func @transform_16(%arg0: i32, %arg1: i32, %arg2: i32) -> (i32, i32) {
    %c0_i32 = arith.constant 0 : i32
    %c0_i32_0 = arith.constant 0 : i32
    %c0_i32_1 = arith.constant 0 : i32
    return %c0_i32, %c0_i32_0 : i32, i32
  }
  func.func @transform_17(%arg0: i32, %arg1: i32, %arg2: i32) -> (i32, i32) {
    %c0_i32 = arith.constant 0 : i32
    %c0_i32_0 = arith.constant 0 : i32
    %c0_i32_1 = arith.constant 0 : i32
    return %c0_i32, %c0_i32_0 : i32, i32
  }
  func.func @transform_18(%arg0: i32, %arg1: i32, %arg2: i32) -> (i32, i32) {
    %c0_i32 = arith.constant 0 : i32
    %c0_i32_0 = arith.constant 0 : i32
    %c0_i32_1 = arith.constant 0 : i32
    return %c0_i32, %c0_i32_0 : i32, i32
  }
  func.func @transform_19(%arg0: i32, %arg1: i32, %arg2: i32) -> (i32, i32, i32) {
    %c0_i32 = arith.constant 0 : i32
    %c0_i32_0 = arith.constant 0 : i32
    return %arg0, %arg1, %c0_i32 : i32, i32, i32
  }
}

</mosaic_0001>

<bundles_post_ra>
// kernel: tpu_custom_call.1
= control target key start
LH: loop header
LB: loop body
LE: loop exit
PB: predicated region body
PF: predicated region fallthrough
CT: control target
= control target key end

     0   :  { %s2428_s0 = inlined_call_operand.vmem [shape: f32[2,8,32], index: 0, kind: input, shape index: {}]   ;;  %s2429_s1 = inlined_call_operand.hbm [shape: bf16[2,8,32], index: 1, kind: input, shape index: {}]   ;;  %s2430_s2 = inlined_call_operand.hbm [shape: bf16[2,8,32], index: 2, kind: input, shape index: {}]   ;;  %s2431_s3 = inlined_call_operand.vmem [shape: bf16[1,32,32], index: 3, kind: input, shape index: {}]   ;;  %s2432_s4 = inlined_call_operand.vmem [shape: f32[1,1,32], index: 4, kind: input, shape index: {}]   ;;  %s2433_s5 = inlined_call_operand.vmem [shape: bf16[1,32,32], index: 5, kind: input, shape index: {}]   ;;  %s2434_s6 = inlined_call_operand.vmem [shape: f32[1,1,32], index: 6, kind: input, shape index: {}]   ;;  %s2435_s7 = inlined_call_operand.hbm [shape: bf16[1,32,32], index: 7, kind: input, shape index: {}]   ;;  %s2436_s8 = inlined_call_operand.vmem [shape: f32[1,1,32], index: 8, kind: input, shape index: {}]   ;;  %s2437_s9 = inlined_call_operand.hbm [shape: bf16[1,32,32], index: 9, kind: input, shape index: {}]   ;;  %s2438_s10 = inlined_call_operand.vmem [shape: f32[1,32], index: 10, kind: input, shape index: {}]   ;;  %s2439_s11 = inlined_call_operand.vmem [shape: f32[1,32], index: 11, kind: input, shape index: {}]   ;;  %s2440_s12 = inlined_call_operand.vmem [shape: f32[1,32], index: 12, kind: input, shape index: {}]   ;;  %s2441_s13 = inlined_call_operand.hbm [shape: bf16[32,64], index: 13, kind: input, shape index: {}]   ;;  %s2442_s14 = inlined_call_operand.vmem [shape: f32[1,64], index: 14, kind: input, shape index: {}]   ;;  %s2443_s15 = inlined_call_operand.vmem [shape: bf16[64,32], index: 15, kind: input, shape index: {}]   ;;  %s2444_s16 = inlined_call_operand.vmem [shape: f32[1,32], index: 16, kind: input, shape index: {}]   ;;  %s2445_s17 = inlined_call_operand.vmem [shape: f32[1,32], index: 17, kind: input, shape index: {}]   ;;  %s2446_s18 = inlined_call_operand.vmem [shape: f32[1,32], index: 18, kind: input, shape index: {}]   ;;  %s2447_s19 = inlined_call_operand.hbm [shape: f32[2,8,32], index: 19, kind: output, shape index: {}]  }
   0x1   :  { %2458 = sst [smem:[#allocation25_spill]] %s2428_s0 }
   0x2   :  { %2459 = sst [smem:[#allocation26_spill]] %s2429_s1 }
   0x3   :  { %2460 = sst [smem:[#allocation27_spill]] %s2430_s2 }
   0x4   :  { %2461 = sst [smem:[#allocation28_spill]] %s2431_s3 }
   0x5   :  { %2462 = sst [smem:[#allocation29_spill]] %s2435_s7 }
   0x6   :  { %2463 = sst [smem:[#allocation30_spill]] %s2437_s9 }
   0x7   :  { %2464 = sst [smem:[#allocation31_spill]] %s2439_s11 }
   0x8   :  { %2465 = sst [smem:[#allocation32_spill]] %s2440_s12 }
   0x9   :  { %2466 = sst [smem:[#allocation33_spill]] %s2441_s13 }
   0xa   :  { %2467 = sst [smem:[#allocation34_spill]] %s2442_s14 }
   0xb   :  { %2468 = sst [smem:[#allocation35_spill]] %s2443_s15 }
   0xc   :  { %2469 = sst [smem:[#allocation36_spill]] %s2444_s16 }
   0xd   :  { %2470 = sst [smem:[#allocation37_spill]] %s2445_s17 }
   0xe   :  { %2471 = sst [smem:[#allocation38_spill]] %s2446_s18 }
   0xf   :  { %2472 = sst [smem:[#allocation39_spill]] %s2447_s19 }
  0x10   :  { %24 = vsyncpa [#allocation4], 0 }
  0x11   :  { %26 = vsyncpa [#allocation4 + $0x1], 0 }
  0x12   :  { %27 = vsyncpa [#allocation7], 0 }
  0x13   :  { %29 = vsyncpa [#allocation7 + $0x1], 0 }
  0x14   :  { %30 = vsyncpa [#allocation10], 0 }
  0x15   :  { %31 = vsyncpa [#allocation5], 0 }
  0x16   :  { %33 = vsyncpa [#allocation5 + $0x1], 0  ;;  %s2145_s0 = smov 0   ;;  %s2147_s30 = smov 0  }
  0x17   :  { %s2149_s20 = smov 0   ;;  %s2151_s21 = smov 0  }
  0x18   :  { %s2153_s1 = smov 0   ;;  %s2155_s22 = smov 0  }
  0x19 LB: > { %2473 = sst [smem:[#allocation18_spill]] %s2011_s0  ;;  %s2176_s2 = sadd.s32 4294967295, %s2031_s22   ;;  %s2031_s22 = sphi %s2155_s22, %s39_s22   ;;  %s2027_s1 = sphi %s2153_s1, %s2508_s1   ;;  %s2023_s21 = sphi %s2151_s21, %s2507_s21   ;;  %s2019_s20 = sphi %s2149_s20, %s2506_s20   ;;  %s2015_s30 = sphi %s2147_s30, %s2510_s30   ;;  %s2011_s0 = sphi %s2145_s0, %s2509_s0  }
  0x1a   : > { %2474 = sst [smem:[#allocation19_spill]] %s2019_s20  ;;  %p1541_p0 = scmp.ge.s32.totalorder %s2031_s22, 1 }
  0x1b   : > { %2475 = sst [smem:[#allocation20_spill]] %s2027_s1  ;;  %p109_p1 = scmp.eq.s32.totalorder %s2176_s2, 0 }
  0x1c   : > { %p509_p2 = scmp.lt.s32.totalorder %s2031_s22, 3  ;;  %s2476_s7 = sld [smem:[#allocation29_spill]] }
  0x1d   : > { %s2033_s26 = smov [#allocation8]   ;;  %p1545_p6 = scmp.ge.s32.totalorder %s2031_s22, 2 }
  0x1e   : > { %p2184_p3 = pnand %p1541_p0, %p509_p2  ;;  %s534_s27 = sshll.u32 %s2033_s26, 4  ;;  %s535_s27 = int_to_ptr.vmem [resolvable:$true] %s534_s27 }
  0x1f   : > { %s2479_s9 = sld [smem:[#allocation30_spill]]  ;;  %s2035_s26 = smov 4  }
  0x20   : > { %p1664_p4 = pneg %p2184_p3  ;;  %s2036_s18 = smov [#allocation9]  }
  0x21   : > { %s551_s19 = sshll.u32 %s2036_s18, 4  ;;  %s2480_s13 = sld [smem:[#allocation33_spill]]  ;;  %s552_s19 = int_to_ptr.vmem [resolvable:$true] %s551_s19 }
  0x22   : > { %s532_s25 = sshll.u32 %s2476_s7, 4  ;;  %p2192_p5 = pnand %p1664_p4, %p109_p1  ;;  %s533_s25 = int_to_ptr.hbm [resolvable:$true] %s532_s25 }
  0x23   : > { %s2034_s7 = smov 64   ;;  %s2037_s23 = smov [#allocation11]  }
  0x24   : > { %1667 = dma.hbm_to_vmem [thread:$0]  (!%p2192_p5), %s533_s25, 256, %s535_s27, [#allocation7], %s2034_s7, %s2034_s7, %s2035_s26  }
  0x25   : > { %s549_s24 = sshll.u32 %s2479_s9, 4  ;;  %s574_s9 = sshll.u32 %s2037_s23, 4  ;;  %s550_s24 = int_to_ptr.hbm [resolvable:$true] %s549_s24  ;;  %s575_s9 = int_to_ptr.vmem [resolvable:$true] %s574_s9 }
  0x26   : > { %1670 = dma.hbm_to_vmem [thread:$0]  (!%p2192_p5), %s550_s24, 256, %s552_s19, [#allocation10], %s2034_s7, %s2034_s7, %s2035_s26  }
  0x27   : > { %s572_s29 = sshll.u32 %s2480_s13, 4  ;;  %s1540_s25 = sadd.s32 4294967294, %s2031_s22   ;;  %s573_s29 = int_to_ptr.hbm [resolvable:$true] %s572_s29 }
  0x28   : > { %1673 = dma.hbm_to_vmem [thread:$0]  (!%p2192_p5), %s573_s29, 256, %s575_s9, [#allocation10], %s2034_s7, %s2034_s7, %s2035_s26  }
  0x29   : > { %s58_s18 = sadd.s32 1, %s2027_s1  ;;  %s95_s27 = sadd.s32 1, %s2019_s20 }
  0x2a   : > { %p60_p7 = scmp.ge.s32.totalorder %s58_s18, 2  ;;  %p102_p8 = scmp.ne.s32.totalorder %s2019_s20, %s2015_s30 }
  0x2b   : > { %p103_p9 = scmp.eq.s32.totalorder %s2031_s22, 0  ;;  %p108_p10 = scmp.ne.s32.totalorder %s2015_s30, %s2011_s0 }
  0x2c   : > { %s2512_s18 = smov (%p60_p7, %s58_s18), 0  ;;  %p496_p13 = scmp.eq.s32.totalorder %s2176_s2, 1 }
  0x2d   : > { %2481 = sst [smem:[#allocation21_spill]] %s2512_s18  ;;  %p2219_p11 = por %p103_p9, %p102_p8 }
  0x2e   : > { %p2225_p12 = por %p109_p1, %p108_p10  ;;  %s90_s9 = ssub.s32 %s2027_s1, %s2512_s18 }
  0x2f   : > { %p93_p0 = scmp.eq.s32.totalorder %s90_s9, 0  ;;  %p502_p2 = scmp.eq.s32.totalorder %s1540_s25, 1 }
  0x30   : > { %p2232_p4 = por %p496_p13, %p102_p8  ;;  %p1688_p5 = scmp.lt.s32.totalorder %s2031_s22, 2 }
  0x31   : > { %s2238_s19 = scalar_select %p93_p0, %s2019_s20, %s95_s27  }
  0x32   : > { %s2484_s17 = scalar_select %p2232_p4, 1, 0 }
  0x33   : > { %2486 = sst [smem:[#allocation23_spill]] %s2238_s19  ;;  %p2240_p7 = por %p502_p2, %p108_p10 }
  0x34   : > { %2485 = sst [smem:[#allocation22_spill]] %s2484_s17  ;;  %s613_s24 = sand.u32 1, %s2019_s20  }
  0x35   : > { %s2487_s28 = scalar_select %p2240_p7, 1, 0 }
  0x36   : > { %s1546_s26 = sshll.u32 %s613_s24, 2  ;;  %s1547_s29 = sshll.u32 %s2027_s1, 2 }
  0x37   : > { %2488 = sst [smem:[#allocation24_spill]] %s2487_s28  ;;  %s617_s25 = scalar_lea.vmem [#allocation3], %s1546_s26 }
  0x38   : > { %s2489_s18 = sld [smem:[#allocation26_spill]]  ;;  %s626_s0 = sshll.u32 %s617_s25, 4  ;;  %s627_s0 = int_to_ptr.vmem [resolvable:$true] %s626_s0 }
  0x39   : > { %p1675_p8 = pnand %p1688_p5, %p2219_p11  ;;  %s2490_s17 = sld [smem:[#allocation27_spill]] }
  0x3a   : > { %s633_s12 = sand.u32 1, %s2031_s22   ;;  %s614_s28 = scalar_lea.sflag [#allocation4], %s613_s24 }
  0x3b   : > { %s637_s1 = scalar_lea.vmem [#allocation6], %s1546_s26  ;;  %s634_s13 = scalar_lea.sflag [#allocation7], %s633_s12 }
  0x3c   : > { %s645_s11 = sshll.u32 %s637_s1, 4  ;;  %s646_s11 = int_to_ptr.vmem [resolvable:$true] %s645_s11 }
  0x3e   : > { %s622_s9 = scalar_lea.hbm %s2489_s18, %s1547_s29  ;;  %654 = sbr.rel (%p2184_p3) target bundleno = 1976 (0x7b8), region = 96 }
  0x3f   : > { %s624_s14 = sshll.u32 %s622_s9, 4  ;;  %s641_s15 = scalar_lea.hbm %s2490_s17, %s1547_s29  ;;  %s625_s14 = int_to_ptr.hbm [resolvable:$true] %s624_s14 }
  0x40   : > { %1677 = dma.hbm_to_vmem [thread:$0]  (!%p1675_p8), %s625_s14, 64, %s627_s0, %s614_s28  }
  0x41   : > { %s643_s20 = sshll.u32 %s641_s15, 4  ;;  %s2258_s18 = sand.u32 (!%p2184_p3), 1, %s2015_s30   ;;  %s644_s20 = int_to_ptr.hbm [resolvable:$true] %s643_s20 }
  0x42   : > { %1680 = dma.hbm_to_vmem [thread:$0]  (!%p1675_p8), %s644_s20, 64, %s646_s11, %s634_s13  }
  0x43   : > { %s1551_s16 = sshll.u32 %s2258_s18, 2  ;;  %s657_s17 = scalar_lea.sflag [#allocation4], %s2258_s18 }
  0x44   : > { %s660_s19 = scalar_lea.vmem [#allocation3], %s1551_s16 }
  0x45   : > { %1990 = dma.done.wait (%p2225_p12), %s657_s17, 64  }
  0x46   : > { %1992 = vsyncadd (%p2225_p12), %s657_s17, 4294967232  ;;  %s666_s11 = sand.u32 1, %s2176_s2   ;;  %s670_s14 = scalar_lea.vmem [#allocation6], %s1551_s16 }
  0x47   : > { %s667_s12 = scalar_lea.sflag [#allocation7], %s666_s11 }
  0x48   : > { %1994 = dma.done.wait (%p2225_p12), %s667_s12, 64  }
  0x49   : > { %1996 = vsyncadd (%p2225_p12), %s667_s12, 4294967232 }
  0x4a   : > { %1998 = dma.done.wait (%p109_p1), [#allocation7], 256  }
  0x4b   : > { %2000 = vsyncadd (%p109_p1), [#allocation7], 4294967040 }
  0x4c   : > { %2002 = dma.done.wait (%p109_p1), [#allocation10], 512  }
  0x4d   : > { %2004 = vsyncadd (%p109_p1), [#allocation10], 4294966784  ;;  %s2491_s20 = sld [smem:[#allocation28_spill]]  ;;  %v1635_v1 = vld [vmem:[%s2433_s5 + $0x8] sm:$0xff]  ;;  %v1634_v3 = vld [vmem:[%s2433_s5] sm:$0xff]  ;;  %vm787_vm0 = vcmask 261120  }
  0x4e   : > { %836 = vmatpush.bf16.msra.mxu1 %v1635_v1  ;;  %v761_v4 = vld [vmem:[%s660_s19] sm:$0xf]  ;;  %v762_v5 = vld [vmem:[%s670_s14] sm:$0xf]  ;;  %v1753_v6 = vld [vmem:[%s2432_s4] ss:$0 sm:$0xff] }
  0x4f   : > { %v1754_v7 = vld [vmem:[%s2434_s6] ss:$0 sm:$0xff]  ;;  %vm882_vm1 = vcmask 64512   ;;  %s2038_s27 = smov 112   ;;  %s2039_s13 = smov 120   ;;  %v1636_v30 = vld [vmem:[#allocation8] sm:$0xff] }
  0x50   : > { %s2040_s16 = smov 104   ;;  %v1637_v29 = vld [vmem:[#allocation8 + $0x8] sm:$0xff]  ;;  %vm917_vm2 = vcmask 1043456   ;;  %s2041_s11 = smov 8   ;;  %vm1127_vm3 = vcmask 130048   ;;  %vm1130_vm4 = vcmask 195584  }
  0x51   : > { %872 = vmatpush.bf16.msra.mxu2 %v1637_v29  ;;  %v1755_v45 = vld [vmem:[%s2436_s8] ss:$0 sm:$0xff]  ;;  %s2042_s12 = smov 24   ;;  %s2043_s14 = smov 16   ;;  %vm1311_vm9 = vcmask 523264  }
  0x52   : > { %837 = vmatpush.bf16.msra.mxu1 %v1634_v3  ;;  %p753_p1 = scmp.lt.s32.totalorder %s2023_s21, 1  ;;  %s2493_s24 = sld [smem:[#allocation25_spill]] }
  0x53   : > { %s2492_s3 = smov %s2491_s20  ;;  %v1633_v0 = vld [vmem:[%s2491_s20 + $0x8] sm:$0xff]  ;;  %s2494_s23 = sld [smem:[#allocation31_spill]] }
  0x54   : > { %v1632_v2 = vld [vmem:[%s2492_s3] sm:$0xff]  ;;  %797 = vmatpush.bf16.msra.mxu0 %v1633_v0  ;;  %s754_s20 = scalar_select %p753_p1, %s2023_s21, 1 }
  0x55   : > { %1575 = vmatmul.msk.bf16.vlgmr.msra.gmra.mxu1 %vm787_vm0, %v762_v5  ;;  %873 = vmatpush.bf16.msra.mxu2 %v1636_v30  ;;  %s2496_s17 = sld [smem:[#allocation35_spill]]  ;;  %s1556_s29 = sshll.u32 %s2258_s18, 3 }
  0x56   : > { %s1557_s1 = sshll.u32 %s754_s20, 3  ;;  %s2497_s28 = sld [smem:[#allocation34_spill]] }
  0x57   : > { %s1629_s2 = sshll.u32 %s2023_s21, 3  ;;  %s2499_s25 = sld [smem:[#allocation37_spill]] }
  0x58   : > { %798 = vmatpush.bf16.msra.mxu0 %v1632_v2  ;;  %1584 = vmatmul.msk.bf16.vlgmr.msra.gmra.mxu2 %vm787_vm0, %v762_v5  ;;  %s759_s26 = scalar_lea.vmem %s2493_s24, %s1557_s1  ;;  %s2502_s15 = sld [smem:[#allocation38_spill]] }
  0x59   : > { %s752_s21 = scalar_lea.vmem [#allocation12], %s1556_s29  ;;  %s1363_s1 = scalar_lea.sflag [#allocation5], %s2258_s18 }
  0x5a   : > { %s1376_s0 = sshll.u32 %s752_s21, 4  ;;  %s1377_s0 = int_to_ptr.vmem [resolvable:$true] %s1376_s0 }
  0x5b   : > { %1566 = vmatmul.msk.bf16.vlgmr.msra.gmra.mxu0 %vm787_vm0, %v761_v4 }
  0xd2   : > { %v839_v9 = vpop.f32.mrf.mxu1 }
  0xd3   : > { %v840_v11 = vadd.f32 %v1754_v7, %v839_v9 }
  0xd5   : > { %v880_v13 = vpack.c.bf16 %v840_v11, %v840_v11 }
  0xd7   : > { %997 = vrot.lane.b32.xlu1 %v880_v13, %s2038_s27  ;;  %939 = vrot.lane.b32.xlu0 %v880_v13, %s2039_s13  ;;  %v887_v14 = vsel %vm882_vm1, %v880_v13, 0 }
  0xd8   : > { %v800_v8 = vpop.f32.mrf.mxu0  ;;  %896 = vmatpush.bf16.xpose.msra.mxu3 %v887_v14 }
  0xd9   : > { %v801_v10 = vadd.f32 %v1753_v6, %v800_v8 }
  0xda   : > { %v841_v16 = vpop.f32.mrf.mxu1 }
  0xdb   : > { %v879_v12 = vpack.c.bf16 %v801_v10, %v801_v10  ;;  %v875_v46 = vpop.f32.mrf.mxu2 }
  0xdc   : > { %v876_v47 = vadd.f32 %v1755_v45, %v875_v46 }
  0xdd   : > { %995 = vrot.lane.b32.xlu2 %v879_v12, %s2038_s27 }
  0xde   : > { %v881_v48 = vpack.c.bf16 %v876_v47, %v876_v47 }
  0xdf   : > { %1054 = vrot.lane.b32.xlu1 %v880_v13, %s2040_s16  ;;  %936 = vrot.lane.b32.xlu0 %v879_v12, %s2039_s13 }
  0xe0   : > { %v802_v15 = vpop.f32.mrf.mxu0  ;;  %1585 = vmatmul.msk.bf16.vlgmr.msra.gmra.mxu3 %vm882_vm1, %v879_v12  ;;  %v919_v49 = vsel %vm917_vm2, %v881_v48, 0 }
  0xe1   : > { %928 = vmatpush.bf16.msrb.mxu0 %v919_v49 }
  0xe3   : > { %v877_v51 = vpop.f32.mrf.mxu2 }
  0xe5   : > { %1052 = vrot.lane.b32.xlu2 %v879_v12, %s2040_s16 }
 0x137   : > { %v996_v21 = vpop.permute.xlu2 %995 }
 0x13f   : > { %v1053_v25 = vpop.permute.xlu2 %1052 }
 0x149   : > { %v998_v17 = vpop.permute.xlu1 %997  ;;  %v940_v18 = vpop.permute.xlu0 %939 }
 0x14a   : > { %v945_v19 = vsel %vm882_vm1, %v940_v18, 0  ;;  %v1003_v20 = vsel %vm882_vm1, %v998_v17, 0 }
 0x14b   : > { %954 = vmatpush.bf16.xpose.msrb.mxu1 %v945_v19  ;;  %1012 = vmatpush.bf16.xpose.msrb.mxu3 %v1003_v20 }
 0x151   : > { %v1055_v22 = vpop.permute.xlu1 %1054  ;;  %v937_v23 = vpop.permute.xlu0 %936 }
 0x152   : > { %v1060_v24 = vsel %vm882_vm1, %v1055_v22, 0  ;;  %1587 = vmatmul.msk.bf16.vlgmr.msrb.gmra.mxu1 %vm882_vm1, %v937_v23  ;;  %1589 = vmatmul.msk.bf16.vlgmr.msrb.gmra.mxu3 %vm882_vm1, %v996_v21 }
 0x153   : > { %1069 = vmatpush.bf16.xpose.msra.mxu1 %v1060_v24 }
 0x162   : > { %1591 = vmatmul.msk.bf16.vlgmr.msra.gmra.mxu1 %vm882_vm1, %v1053_v25 }
 0x163   : > { %v898_v26 = vpop.f32.mrf.mxu3 }
 0x164   : > { %v902_v27 = vsel %vm882_vm1, %v898_v26, -inf }
 0x165   : > { %903 = vmax.xlane.f32.xlu1 %v902_v27 }
 0x16b   : > { %v900_v28 = vpop.f32.mrf.mxu3 }
 0x1cf   : > { %v956_v31 = vpop.f32.mrf.mxu1 }
 0x1d0   : > { %v960_v32 = vsel %vm882_vm1, %v956_v31, -inf }
 0x1d1   : > { %961 = vmax.xlane.f32.xlu0 %v960_v32 }
 0x1d5   : > { %v1014_v33 = vpop.f32.mrf.mxu3 }
 0x1d6   : > { %v1018_v44 = vsel %vm882_vm1, %v1014_v33, -inf }
 0x1d7   : > { %v958_v34 = vpop.f32.mrf.mxu1 }
 0x1d8   : > { %v904_v35 = vpop.xlane.xlu1 %903 }
 0x1d9   : > { %v905_v36 = vsub.f32 %v898_v26, %v904_v35 }
 0x1db   : > { %v906_v37 = vmul.f32 1.442695, %v905_v36 }
 0x1dd   : > { %1763 = vpow2.f32 %v906_v37  ;;  %v1016_v38 = vpop.f32.mrf.mxu3 }
 0x1df   : > { %v1071_v39 = vpop.f32.mrf.mxu1 }
 0x1e0   : > { %v1075_v40 = vsel %vm882_vm1, %v1071_v39, -inf }
 0x1e1   : > { %1076 = vmax.xlane.f32.xlu2 %v1075_v40 }
 0x1e3   : > { %v1764_v41 = vpop.eup %1763 }
 0x1e4   : > { %v908_v42 = vsel %vm882_vm1, %v1764_v41, 0.0 }
 0x1e5   : > { %909 = vadd.xlane.f32.xlu1 %v908_v42  ;;  %v1638_v42 = vld [vmem:[#allocation9] sm:$0xff] }
 0x1e7   : > { %v1073_v43 = vpop.f32.mrf.mxu1 }
 0x1e9   : > { %1019 = vmax.xlane.f32.xlu2 %v1018_v44 }
 0x201   : > { %973 = vrot.lane.b32.xlu2 %v881_v48, %s2039_s13 }
 0x244   : > { %v962_v50 = vpop.xlane.xlu0 %961 }
 0x245   : > { %v963_v52 = vsub.f32 %v956_v31, %v962_v50  ;;  %v1756_v50 = vld [vmem:[%s2438_s10] ss:$0 sm:$0xff] }
 0x247   : > { %v964_v53 = vmul.f32 1.442695, %v963_v52 }
 0x249   : > { %1765 = vpow2.f32 %v964_v53 }
 0x24f   : > { %v1766_v54 = vpop.eup %1765 }
 0x250   : > { %v966_v55 = vsel %vm882_vm1, %v1766_v54, 0.0 }
 0x251   : > { %967 = vadd.xlane.f32.xlu0 %v966_v55 }
 0x254   : > { %v1077_v56 = vpop.xlane.xlu2 %1076 }
 0x255   : > { %v1078_v57 = vsub.f32 %v1071_v39, %v1077_v56 }
 0x257   : > { %v1079_v58 = vmul.f32 1.442695, %v1078_v57 }
 0x258   : > { %v910_v59 = vpop.xlane.xlu1 %909 }
 0x259   : > { %1767 = vpow2.f32 %v1079_v58  ;;  %v2044_v58 = vmov 32.0  }
 0x25a   : > { %1769 = vrcp.f32 %v910_v59 }
 0x25c   : > { %v1020_v60 = vpop.xlane.xlu2 %1019 }
 0x25d   : > { %v1021_v61 = vsub.f32 %v1014_v33, %v1020_v60 }
 0x25f   : > { %v1768_v62 = vpop.eup %1767  ;;  %v1022_v63 = vmul.f32 1.442695, %v1021_v61 }
 0x260   : > { %v1770_v0 = vpop.eup %1769  ;;  %v1081_v1 = vsel %vm882_vm1, %v1768_v62, 0.0 }
 0x261   : > { %v912_v2 = vmul.f32 %v1770_v0, %v1764_v41  ;;  %1771 = vpow2.f32 %v1022_v63  ;;  %1082 = vadd.xlane.f32.xlu0 %v1081_v1  ;;  %v1639_v41 = vld [vmem:[#allocation9 + $0x8] sm:$0xff] }
 0x262   : > { %1159 = vmatpush.bf16.msra.mxu3 %v1639_v41 }
 0x263   : > { %v913_v3 = vpack.c.bf16 %v912_v2, %v912_v2 }
 0x264   : > { %v974_v6 = vpop.permute.xlu2 %973 }
 0x265   : > { %1586 = vmatmul.msk.bf16.vlgmr.msrb.gmra.mxu0 %vm882_vm1, %v913_v3  ;;  %v979_v7 = vsel %vm917_vm2, %v974_v6, 0  ;;  %v1641_v6 = vld [vmem:[#allocation11 + $0x8] sm:$0xff] }
 0x266   : > { %988 = vmatpush.bf16.msrb.mxu2 %v979_v7  ;;  %1160 = vmatpush.bf16.msra.mxu3 %v1638_v42  ;;  %v1640_v7 = vld [vmem:[#allocation11] sm:$0xff] }
 0x267   : > { %v1772_v4 = vpop.eup %1771 }
 0x268   : > { %v1024_v5 = vsel %vm882_vm1, %v1772_v4, 0.0 }
 0x269   : > { %1025 = vadd.xlane.f32.xlu1 %v1024_v5 }
 0x275   : > { %1087 = vrot.lane.b32.xlu0 %v881_v48, %s2040_s16  ;;  %s2500_s16 = sld [smem:[#allocation39_spill]] }
 0x27b   : > { %s1374_s19 = scalar_lea.hbm %s2500_s16, %s1629_s2  ;;  %s1957_s29 = scalar_lea.hbm %s2500_s16, 16 }
 0x27c   : > { %s1378_s20 = sshll.u32 %s1374_s19, 4  ;;  %s1379_s20 = int_to_ptr.hbm [resolvable:$true] %s1378_s20 }
 0x282   : > { %1030 = vrot.lane.b32.xlu1 %v881_v48, %s2038_s27  ;;  %s2495_s27 = sld [smem:[#allocation32_spill]] }
 0x2c4   : > { %v968_v8 = vpop.xlane.xlu0 %967 }
 0x2c5   : > { %1773 = vrcp.f32 %v968_v8 }
 0x2cb   : > { %v1774_v9 = vpop.eup %1773 }
 0x2cc   : > { %v970_v10 = vmul.f32 %v1774_v9, %v1766_v54  ;;  %v1186_v54 = vld [vmem:[%s759_s26] sm:$0xff]  ;;  %s2498_s26 = sld [smem:[#allocation36_spill]] }
 0x2ce   : > { %v971_v11 = vpack.c.bf16 %v970_v10, %v970_v10 }
 0x2d0   : > { %1588 = vmatmul.msk.bf16.vlgmr.msrb.gmra.mxu2 %vm882_vm1, %v971_v11 }
 0x2d2   : > { %v1760_v42 = vld [vmem:[%s2498_s26] ss:$0 sm:$0xff] }
 0x2d4   : > { %v1083_v12 = vpop.xlane.xlu0 %1082 }
 0x2d5   : > { %1775 = vrcp.f32 %v1083_v12 }
 0x2db   : > { %v1776_v14 = vpop.eup %1775 }
 0x2dc   : > { %v1085_v15 = vmul.f32 %v1776_v14, %v1768_v62  ;;  %v1026_v16 = vpop.xlane.xlu1 %1025 }
 0x2dd   : > { %1777 = vrcp.f32 %v1026_v16 }
 0x2de   : > { %v1086_v19 = vpack.c.bf16 %v1085_v15, %v1085_v15  ;;  %1779 = vrcp.f32 %v2044_v58 }
 0x2e2   : > { %v930_v13 = vpop.f32.mrf.mxu0 }
 0x2e3   : > { %v1778_v21 = vpop.eup %1777  ;;  %v934_v44 = vpack.c.bf16 %v930_v13, %v930_v13 }
 0x2e4   : > { %v1028_v22 = vmul.f32 %v1778_v21, %v1772_v4  ;;  %v1780_v59 = vpop.eup %1779 }
 0x2e5   : > { %v1195_v60 = vmul.f32 32.0, %v1780_v59  ;;  %vm1199_vm5 = vweird.f32 %v1780_v59 }
 0x2e6   : > { %v1029_v25 = vpack.c.bf16 %v1028_v22, %v1028_v22 }
 0x2e7   : > { %v1088_v17 = vpop.permute.xlu0 %1087  ;;  %v1196_v61 = vsub.f32 1.0, %v1195_v60 }
 0x2e8   : > { %v1093_v18 = vsel %vm917_vm2, %v1088_v17, 0  ;;  %v1757_v17 = vld [vmem:[%s2494_s23] ss:$0 sm:$0xff] }
 0x2e9   : > { %1102 = vmatpush.bf16.msra.mxu2 %v1093_v18  ;;  %v1197_v62 = vmul.f32 %v1780_v59, %v1196_v61 }
 0x2ea   : > { %v932_v20 = vpop.f32.mrf.mxu0 }
 0x2eb   : > { %v1198_v63 = vadd.f32 %v1780_v59, %v1197_v62  ;;  %v1761_v62 = vld [vmem:[%s2499_s25] ss:$0 sm:$0xff] }
 0x2ec   : > { %1592 = vmatmul.msk.bf16.vlgmr.msra.gmra.mxu2 %vm882_vm1, %v1086_v19  ;;  %v1758_v19 = vld [vmem:[%s2495_s27] ss:$0 sm:$0xff] }
 0x2ed   : > { %v2348_v0 = vsel %vm1199_vm5, %v1780_v59, %v1198_v63 }
 0x2f4   : > { %v1031_v23 = vpop.permute.xlu1 %1030 }
 0x2f5   : > { %v1036_v24 = vsel %vm917_vm2, %v1031_v23, 0 }
 0x2f6   : > { %1045 = vmatpush.bf16.msra.mxu0 %v1036_v24  ;;  %v1645_v24 = vld [vmem:[%s2496_s17 + $0x18] sm:$0xff] }
 0x2f7   : > { %1319 = vmatpush.bf16.msrb.mxu1 %v1645_v24 }
 0x2f9   : > { %1590 = vmatmul.msk.bf16.vlgmr.msra.gmra.mxu0 %vm882_vm1, %v1029_v25  ;;  %v1644_v25 = vld [vmem:[%s2496_s17 + $0x10] sm:$0xff] }
 0x2fa   : > { %1258 = vmatpush.bf16.msrb.mxu0 %v1641_v6 }
 0x2fb   : > { %1320 = vmatpush.bf16.msrb.mxu1 %v1644_v25 }
 0x2fe   : > { %1259 = vmatpush.bf16.msrb.mxu0 %v1640_v7 }
 0x353   : > { %v990_v26 = vpop.f32.mrf.mxu2 }
 0x354   : > { %v994_v27 = vpack.c.bf16 %v990_v26, %v990_v26  ;;  %v1643_v26 = vld [vmem:[%s2496_s17 + $0x8] sm:$0xff] }
 0x355   : > { %1321 = vmatpush.bf16.msrb.mxu1 %v1643_v26 }
 0x356   : > { %v1110_v28 = vunpack.c.l.b16 %v994_v27  ;;  %v1642_v27 = vld [vmem:[%s2496_s17] sm:$0xff] }
 0x358   : > { %v1111_v29 = vpack.c.b16 %v1110_v28, %v1110_v28  ;;  %v1759_v28 = vld [vmem:[%s2497_s28] ss:$0 sm:$0xff]  ;;  %s1951_s28 = sshra.s32 %s1379_s20, 4  ;;  %s1952_s28 = int_to_ptr.hbm [resolvable:$true] %s1951_s28 }
 0x359   : > { %1322 = vmatpush.bf16.msrb.mxu1 %v1642_v27  ;;  %s1953_s7 = scalar_lea.hbm %s1952_s28, 8  ;;  %p1958_p11 = scmp.lt.s32.totalorder %s1952_s28, %s2500_s16 }
 0x35a   : > { %1112 = vrot.lane.b32.xlu2 %v1111_v29, %s2041_s11  ;;  %p1954_p3 = scmp.ne.s32.totalorder %s1952_s28, %s1953_s7  ;;  %p1959_p12 = scmp.lt.s32.totalorder %s1957_s29, %s1953_s7 }
 0x35b   : > { %v992_v30 = vpop.f32.mrf.mxu2 }
 0x35c   : > { %p1955_p9 = pnand %p1954_p3, %p2232_p4  ;;  %p1960_p13 = por %p1959_p12, %p1958_p11 }
 0x35e   : > { %p1956_p10 = pneg %p1955_p9 }
 0x360   : > { %p1961_p0 = pnand %p1960_p13, %p1956_p10 }
 0x36f   : > { %v1104_v31 = vpop.f32.mrf.mxu2 }
 0x370   : > { %v1108_v32 = vpack.c.bf16 %v1104_v31, %v1104_v31 }
 0x372   : > { %v1120_v33 = vunpack.c.l.b16 %v1108_v32 }
 0x374   : > { %v1121_v34 = vpack.c.b16 %v1120_v33, %v1120_v33 }
 0x376   : > { %v1047_v35 = vpop.f32.mrf.mxu0  ;;  %1122 = vrot.lane.b32.xlu2 %v1121_v34, %s2042_s12 }
 0x377   : > { %v1051_v36 = vpack.c.bf16 %v1047_v35, %v1047_v35  ;;  %v1106_v37 = vpop.f32.mrf.mxu2 }
 0x379   : > { %v1115_v38 = vunpack.c.l.b16 %v1051_v36 }
 0x37b   : > { %v1116_v39 = vpack.c.b16 %v1115_v38, %v1115_v38 }
 0x37d   : > { %1117 = vrot.lane.b32.xlu0 %v1116_v39, %s2043_s14 }
 0x37e   : > { %v1049_v40 = vpop.f32.mrf.mxu0 }
 0x3b4   : > { %v1113_v43 = vpop.permute.xlu2 %1112 }
 0x3b5   : > { %v1126_v45 = vsel %vm882_vm1, %v934_v44, %v1113_v43 }
 0x3d0   : > { %v1123_v47 = vpop.permute.xlu2 %1122 }
 0x3ef   : > { %v1118_v46 = vpop.permute.xlu0 %1117 }
 0x3f0   : > { %v1129_v48 = vsel %vm1127_vm3, %v1126_v45, %v1118_v46 }
 0x3f1   : > { %v1132_v49 = vsel %vm1130_vm4, %v1129_v48, %v1123_v47 }
 0x3f2   : > { %1601 = vmatmul.msk.bf16.vlgmr.msra.gmra.mxu3 %vm787_vm0, %v1132_v49 }
 0x475   : > { %v1162_v51 = vpop.f32.mrf.mxu3 }
 0x476   : > { %v1174_v52 = vadd.f32 %v1756_v50, %v1162_v51 }
 0x478   : > { %1175 = vst.msk [vmem:[#allocation2] sm:$0xff] %vm787_vm0, %v1174_v52 }
 0x47d   : > { %v1164_v53 = vpop.f32.mrf.mxu3 }
 0x47f   : > { %v1187_v55 = vld [vmem:[#allocation2] sm:$0xff] }
 0x480   : > { %v1188_v56 = vadd.f32 %v1187_v55, %v1186_v54 }
 0x482   : > { %v1191_v57 = vsel %vm787_vm0, %v1188_v56, 0.0 }
 0x483   : > { %1192 = vadd.xlane.f32.xlu1 %v1191_v57 }
 0x4f6   : > { %v1193_v1 = vpop.xlane.xlu1 %1192 }
 0x4f7   : > { %v1201_v2 = vmul.f32 %v2348_v0, %v1193_v1  ;;  %v1762_v1 = vld [vmem:[%s2502_s15] ss:$0 sm:$0xff] }
 0x4f9   : > { %v1202_v3 = vsub.f32 %v1188_v56, %v1201_v2 }
 0x4fb   : > { %v1203_v4 = vmul.f32 %v1202_v3, %v1202_v3 }
 0x4fd   : > { %v1204_v5 = vsel %vm787_vm0, %v1203_v4, 0.0 }
 0x4fe   : > { %1205 = vadd.xlane.f32.xlu0 %v1204_v5 }
 0x571   : > { %v1206_v8 = vpop.xlane.xlu0 %1205 }
 0x572   : > { %v1207_v9 = vmul.f32 %v1206_v8, %v2348_v0 }
 0x574   : > { %v1208_v10 = vadd.f32 1e-12, %v1207_v9 }
 0x576   : > { %1781 = vrsqrt.f32 %v1208_v10  ;;  %vm1215_vm7 = vweird.f32 %v1208_v10 }
 0x57c   : > { %v1782_v11 = vpop.eup %1781 }
 0x57d   : > { %v1210_v12 = vmul.f32 %v1782_v11, %v1208_v10  ;;  %vm1216_vm6 = vweird.f32 %v1782_v11 }
 0x57e   : > { %vm1217_vm8 = vmor %vm1215_vm7, %vm1216_vm6 }
 0x57f   : > { %v1211_v13 = vmul.f32 %v1782_v11, %v1210_v12 }
 0x581   : > { %v1212_v14 = vmul.f32 0.5, %v1211_v13 }
 0x583   : > { %v1213_v15 = vsub.f32 1.5, %v1212_v14 }
 0x585   : > { %v1214_v16 = vmul.f32 %v1782_v11, %v1213_v15 }
 0x587   : > { %v1218_v18 = vsel %vm1217_vm8, %v1782_v11, %v1214_v16 }
 0x588   : > { %v1219_v20 = vmul.f32 %v1218_v18, %v1202_v3 }
 0x58a   : > { %v1223_v21 = vmul.f32 %v1757_v17, %v1219_v20 }
 0x58c   : > { %v1227_v22 = vadd.f32 %v1758_v19, %v1223_v21 }
 0x58e   : > { %v1228_v23 = vpack.c.bf16 %v1227_v22, %v1227_v22 }
 0x590   : > { %1610 = vmatmul.msk.bf16.vlgmr.msrb.gmra.mxu0 %vm787_vm0, %v1228_v23 }
 0x60d   : > { %v1261_v29 = vpop.f32.mrf.mxu0 }
 0x60e   : > { %v1262_v30 = vadd.f32 %v1759_v28, %v1261_v29 }
 0x610   : > { %v1266_v31 = vmul.f32 0.044715, %v1262_v30  ;;  %v1265_v38 = vmul.f32 0.5, %v1262_v30 }
 0x612   : > { %v1267_v32 = vmul.f32 %v1266_v31, %v1262_v30 }
 0x614   : > { %v1268_v33 = vmul.f32 %v1267_v32, %v1262_v30 }
 0x615   : > { %v1263_v34 = vpop.f32.mrf.mxu0 }
 0x616   : > { %v1269_v35 = vadd.f32 %v1268_v33, %v1262_v30 }
 0x618   : > { %v1270_v36 = vmul.f32 0.7978846, %v1269_v35 }
 0x61a   : > { %1783 = vtanh.f32 %v1270_v36 }
 0x620   : > { %v1784_v37 = vpop.eup %1783 }
 0x621   : > { %v1272_v39 = vadd.f32 1.0, %v1784_v37 }
 0x623   : > { %v1273_v40 = vmul.f32 %v1272_v39, %v1265_v38 }
 0x625   : > { %v1274_v41 = vpack.c.bf16 %v1273_v40, %v1273_v40 }
 0x627   : > { %1627 = vmatmul.msk.bf16.vlgmr.msrb.gmra.mxu1 %vm1311_vm9, %v1274_v41 }
 0x6a4   : > { %v1324_v43 = vpop.f32.mrf.mxu1 }
 0x6a5   : > { %v1325_v44 = vadd.f32 %v1760_v42, %v1324_v43 }
 0x6a7   : > { %v1328_v45 = vadd.f32 %v1325_v44, %v1227_v22 }
 0x6a9   : > { %v1331_v46 = vsel %vm787_vm0, %v1328_v45, 0.0 }
 0x6aa   : > { %1332 = vadd.xlane.f32.xlu2 %v1331_v46 }
 0x6ac   : > { %v1326_v47 = vpop.f32.mrf.mxu1 }
 0x71d   : > { %v1333_v48 = vpop.xlane.xlu2 %1332 }
 0x71e   : > { %v1334_v49 = vmul.f32 %v1333_v48, %v2348_v0 }
 0x720   : > { %v1335_v50 = vsub.f32 %v1328_v45, %v1334_v49 }
 0x722   : > { %v1336_v51 = vmul.f32 %v1335_v50, %v1335_v50 }
 0x724   : > { %v1337_v52 = vsel %vm787_vm0, %v1336_v51, 0.0 }
 0x725   : > { %1338 = vadd.xlane.f32.xlu1 %v1337_v52 }
 0x798   : > { %v1339_v53 = vpop.xlane.xlu1 %1338 }
 0x799   : > { %v1340_v54 = vmul.f32 %v1339_v53, %v2348_v0 }
 0x79b   : > { %v1341_v55 = vadd.f32 1e-12, %v1340_v54 }
 0x79d   : > { %1785 = vrsqrt.f32 %v1341_v55  ;;  %vm1348_vm11 = vweird.f32 %v1341_v55 }
 0x7a3   : > { %v1786_v56 = vpop.eup %1785 }
 0x7a4   : > { %v1343_v57 = vmul.f32 %v1786_v56, %v1341_v55  ;;  %vm1349_vm10 = vweird.f32 %v1786_v56 }
 0x7a5   : > { %vm1350_vm12 = vmor %vm1348_vm11, %vm1349_vm10 }
 0x7a6   : > { %v1344_v58 = vmul.f32 %v1786_v56, %v1343_v57 }
 0x7a8   : > { %v1345_v59 = vmul.f32 0.5, %v1344_v58 }
 0x7aa   : > { %v1346_v60 = vsub.f32 1.5, %v1345_v59 }
 0x7ac   : > { %v1347_v61 = vmul.f32 %v1786_v56, %v1346_v60 }
 0x7ae   : > { %v1351_v63 = vsel %vm1350_vm12, %v1786_v56, %v1347_v61 }
 0x7af   : > { %v1352_v0 = vmul.f32 %v1351_v63, %v1335_v50 }
 0x7b1   : > { %v1356_v2 = vmul.f32 %v1761_v62, %v1352_v0 }
 0x7b3   : > { %v1360_v3 = vadd.f32 %v1762_v1, %v1356_v2 }
 0x7b5   : > { %1361 = vst.msk [vmem:[%s752_s21] sm:$0xff] %vm787_vm0, %v1360_v3 }
 0x7b6   : > { %1964 = shalt.err (!%p1961_p0)
}
 0x7b7   : > { %1662 = dma.vmem_to_hbm [thread:$0]  (%p2232_p4), %s1377_s0, 128, %s1379_s20, %s1363_s1  }
 0x7b8 PF: > { %s2503_s18 = sld [smem:[#allocation18_spill]]  ;;  %p1682_p2 = pnand %p1545_p6, %p2240_p7 }
 0x7ba   : > { %p1683_p5 = pneg %p1682_p2 }
 0x7be   : > { %s1390_s25 = sand.u32 1, %s2503_s18  }
 0x7bf   : > { %s1391_s27 = scalar_lea.sflag [#allocation5], %s1390_s25 }
 0x7c0   : > { %2006 = dma.done.wait (%p1683_p5), %s1391_s27, 128  }
 0x7c1   : > { %2008 = vsyncadd (%p1683_p5), %s1391_s27, 4294967168  ;;  %s39_s22 = sadd.s32 1, %s2031_s22   ;;  %s2505_s13 = sld [smem:[#allocation19_spill]] }
 0x7c2   : > { %p36_p8 = scmp.ge.s32.totalorder %s39_s22, 4   ;;  %s2506_s20 = sld [smem:[#allocation23_spill]] }
 0x7c3   : > { %s2507_s21 = sld [smem:[#allocation20_spill]]  ;;  %s2509_s0 = smov %s2015_s30 }
 0x7c4   : > { %s2508_s1 = sld [smem:[#allocation21_spill]]  ;;  %38 = sbr.rel (!%p36_p8) target bundleno = 25 (0x19), region = 188 }
 0x7c7   : > { %s2510_s30 = smov %s2505_s13 }
 0x7c9   :  { %1397 = vsyncpa [#allocation4], 1 }
 0x7ca   :  { %1399 = vsyncpa [#allocation4 + $0x1], 1 }
 0x7cb   :  { %1400 = vsyncpa [#allocation7], 1 }
 0x7cc   :  { %1402 = vsyncpa [#allocation7 + $0x1], 1 }
 0x7cd   :  { %1403 = vsyncpa [#allocation10], 1 }
 0x7ce   :  { %1404 = vsyncpa [#allocation5], 1 }
 0x7cf   :  { %1406 = vsyncpa [#allocation5 + $0x1], 1 }

</bundles_post_ra>
